<compile_context>
chip_gen: v5e
topology: v5e:2x2
jax: 0.10.0
libtpu: 0.0.40
codegen_flags: <defaults>
</compile_context>

<pallas_src>
import jax
import jax.numpy as jnp
from jax.experimental import pallas as pl
from jax.experimental.pallas import tpu as pltpu

# ---- small synthetic model config ------------------------------------------
B = 2            # batch
S = 8            # current sequence length being processed
D = 32           # d_model
H = 4            # n_heads
DH = D // H      # d_head = 8
DH2 = DH // 2    # rotary half = 4
FF_MULT = 4
FFD = D * FF_MULT    # 128
MAX_T = 16           # max_seq_len (kv-cache length)
EPS = 1e-5           # nn.LayerNorm default eps
N = B * S            # total tokens


def _layernorm(x, w, b):
    # torch nn.LayerNorm semantics: biased variance, eps inside rsqrt
    mu = jnp.mean(x, axis=-1, keepdims=True)
    var = jnp.mean((x - mu) ** 2, axis=-1, keepdims=True)
    return (x - mu) * jax.lax.rsqrt(var + EPS) * w + b


# ---------------------------------------------------------------------------
# Fused kernel: one grid step == one batch element (S tokens).
# ---------------------------------------------------------------------------
def fused_block_kernel(pos_ref,                                   # SMEM (S,) int32
                       x_ref, n1w_ref, n1b_ref, w_all_ref, cos_ref, sin_ref,
                       mask_ref, wproj_ref, n2w_ref, n2b_ref, w_gu_ref, wdown_ref,
                       kc_in_ref, vc_in_ref,
                       out_ref, kc_out_ref, vc_out_ref):
    x = x_ref[...]                                                 # (S, D)
    xn = _layernorm(x, n1w_ref[...], n1b_ref[...])

    # one fused matmul: [q | k | v | q_partner | k_partner]  -> (S, 5D)
    qkvpp = jnp.dot(xn, w_all_ref[...], preferred_element_type=jnp.float32)
    q, k, v = qkvpp[:, :D], qkvpp[:, D:2 * D], qkvpp[:, 2 * D:3 * D]
    qp, kp = qkvpp[:, 3 * D:4 * D], qkvpp[:, 4 * D:5 * D]

    # full-width RoPE: cos duplicated per head-half, sin carries the +/- sign
    cos = cos_ref[...]                                             # (S, D)
    sin = sin_ref[...]                                             # (S, D)
    q_rot = q * cos + qp * sin                                     # (S, D) lane-dense
    k_rot = k * cos + kp * sin

    def to_heads(t):                                               # (S, D) -> (H, S, DH)
        return jnp.concatenate(
            [t[None, :, h * DH:(h + 1) * DH] for h in range(H)], axis=0)

    q_h = to_heads(q_rot)
    k_h = to_heads(k_rot)
    v_h = to_heads(v)

    # ---- KV-cache update in place (caches aliased input<->output) ----------
    # TODO(synk): assumes contiguous positions starting at input_pos[0] (standard
    # prefill/decode); arbitrary non-contiguous scatter would need per-row stores.
    pos0 = pos_ref[0]
    kc_out_ref[0] = kc_in_ref[0]                                   # (H, MAX_T, DH)
    vc_out_ref[0] = vc_in_ref[0]
    kc_out_ref[0, :, pl.ds(pos0, S), :] = k_h
    vc_out_ref[0, :, pl.ds(pos0, S), :] = v_h
    kc = kc_out_ref[0]                                             # updated cache
    vc = vc_out_ref[0]

    # ---- batched SDPA over all heads (one dot_general, no .T) --------------
    scale = 1.0 / float(DH) ** 0.5
    s = jax.lax.dot_general(q_h, kc, (((2,), (2,)), ((0,), (0,))),
                            preferred_element_type=jnp.float32) * scale    # (H,S,MAX_T)
    s = s + mask_ref[...][None]                                    # additive mask
    m = jnp.max(s, axis=-1, keepdims=True)
    e = jnp.exp(s - m)
    p = e * pl.reciprocal(jnp.sum(e, axis=-1, keepdims=True), approx=True)  # EUP
    ctx = jax.lax.dot_general(p, vc, (((2,), (1,)), ((0,), (0,))),
                              preferred_element_type=jnp.float32)           # (H,S,DH)
    wv = jnp.concatenate([ctx[h] for h in range(H)], axis=1)                # (S, D)

    # ---- attention out-proj + residual --------------------------------------
    h1 = x + jnp.dot(wv, wproj_ref[...], preferred_element_type=jnp.float32)

    # ---- LN2 + fused SwiGLU + residual ---------------------------------------
    xn2 = _layernorm(h1, n2w_ref[...], n2b_ref[...])
    gu = jnp.dot(xn2, w_gu_ref[...], preferred_element_type=jnp.float32)    # (S, 2*FFD)
    gate, up = gu[:, :FFD], gu[:, FFD:]
    ff = jnp.dot(gate * jax.nn.sigmoid(gate) * up, wdown_ref[...],
                 preferred_element_type=jnp.float32)
    out_ref[...] = h1 + ff


# ---------------------------------------------------------------------------
# Wrapper
# ---------------------------------------------------------------------------
def _prep_rope_tables(cos, sin):
    # (S, DH2) -> (S, D): cos duplicated per head-half; sin sign-folded (-sin | +sin)
    cos_full = jnp.tile(jnp.concatenate([cos, cos], axis=1), (1, H))
    sin_signed = jnp.tile(jnp.concatenate([-sin, sin], axis=1), (1, H))
    return cos_full, sin_signed


def _prep_weights(params):
    wqkv = params["wqkv"]
    wq, wk, wv = wqkv[:, :D], wqkv[:, D:2 * D], wqkv[:, 2 * D:]
    idx = jnp.arange(D)
    partner = jnp.where(idx % DH < DH2, idx + DH2, idx - DH2)      # rotate-half perm
    # fused [Wq | Wk | Wv | Wq_perm | Wk_perm]: the permuted copies produce the
    # RoPE "partner" columns directly out of the QKV matmul (exact column reorder).
    w_all = jnp.concatenate([wq, wk, wv, wq[:, partner], wk[:, partner]], axis=1)
    w_gu = jnp.concatenate([params["wgate"], params["wup"]], axis=1)  # (D, 2*FFD)
    return w_all, w_gu


@jax.jit
def transformer_block(x, input_pos, cos, sin, mask, params, k_cache, v_cache):
    """x: (B, S, D) f32. Returns (out (B,S,D), updated k_cache, updated v_cache)."""
    x2d = x.reshape(N, D)
    cos_full, sin_signed = _prep_rope_tables(cos, sin)
    w_all, w_gu = _prep_weights(params)

    rep = lambda *_: (0, 0)              # weights / tables / mask: resident across grid
    per_tok = lambda b, *_: (b, 0)       # token slab of this batch
    per_batch4 = lambda b, *_: (b, 0, 0, 0)

    grid_spec = pltpu.PrefetchScalarGridSpec(
        num_scalar_prefetch=1,
        grid=(B,),
        in_specs=[
            pl.BlockSpec((S, D), per_tok),                 # x
            pl.BlockSpec((1, D), rep),                     # norm1 weight
            pl.BlockSpec((1, D), rep),                     # norm1 bias
            pl.BlockSpec((D, 5 * D), rep),                 # fused qkv(+partner) weight
            pl.BlockSpec((S, D), rep),                     # cos table
            pl.BlockSpec((S, D), rep),                     # signed sin table
            pl.BlockSpec((S, MAX_T), rep),                 # additive attention mask
            pl.BlockSpec((D, D), rep),                     # att_proj
            pl.BlockSpec((1, D), rep),                     # norm2 weight
            pl.BlockSpec((1, D), rep),                     # norm2 bias
            pl.BlockSpec((D, 2 * FFD), rep),               # fused gate|up weight
            pl.BlockSpec((FFD, D), rep),                   # down proj
            pl.BlockSpec((1, H, MAX_T, DH), per_batch4),   # k cache
            pl.BlockSpec((1, H, MAX_T, DH), per_batch4),   # v cache
        ],
        out_specs=[
            pl.BlockSpec((S, D), per_tok),
            pl.BlockSpec((1, H, MAX_T, DH), per_batch4),
            pl.BlockSpec((1, H, MAX_T, DH), per_batch4),
        ],
    )

    def run(aliases):
        return pl.pallas_call(
            fused_block_kernel,
            grid_spec=grid_spec,
            out_shape=(
                jax.ShapeDtypeStruct((N, D), jnp.float32),
                jax.ShapeDtypeStruct((B, H, MAX_T, DH), jnp.float32),
                jax.ShapeDtypeStruct((B, H, MAX_T, DH), jnp.float32),
            ),
            input_output_aliases=aliases,
            compiler_params=pltpu.CompilerParams(
                dimension_semantics=("parallel",)),  # v7x: 2 TCs split the batch
        )(input_pos, x2d, params["n1w"], params["n1b"], w_all, cos_full, sin_signed,
          mask, params["wproj"], params["n2w"], params["n2b"], w_gu, params["wdown"],
          k_cache, v_cache)

    # Alias caches in-place (indices count the scalar-prefetch operand: k=13, v=14).
    # The kernel fully writes the cache output blocks, so results are identical with
    # or without aliasing; fall back to no aliasing if the index convention differs.
    try:
        out2d, kc, vc = run({13: 1, 14: 2})
    except Exception:  # noqa: BLE001 - alias-index convention fallback only
        out2d, kc, vc = run({})

    return out2d.reshape(B, S, D), kc, vc


# ---------------------------------------------------------------------------
# Pure-JAX reference (mirrors the PyTorch forward)
# ---------------------------------------------------------------------------
def reference_block(x, input_pos, cos, sin, mask, params, k_cache, v_cache):
    def rope(t):  # t: (B, S, H, DH)
        c = cos[None, :, None, :]
        s_ = sin[None, :, None, :]
        t1, t2 = t[..., :DH2], t[..., DH2:]
        return jnp.concatenate([t1 * c - t2 * s_, t2 * c + t1 * s_], axis=-1)

    xn = _layernorm(x, params["n1w"], params["n1b"])
    qkv = xn @ params["wqkv"]
    q, k, v = jnp.split(qkv, 3, axis=-1)
    q = rope(q.reshape(B, S, H, DH)).transpose(0, 2, 1, 3)
    k = rope(k.reshape(B, S, H, DH)).transpose(0, 2, 1, 3)
    v = v.reshape(B, S, H, DH).transpose(0, 2, 1, 3)
    kc = k_cache.at[:, :, input_pos, :].set(k)
    vc = v_cache.at[:, :, input_pos, :].set(v)
    s = jnp.einsum("bhqd,bhkd->bhqk", q, kc) / (DH ** 0.5) + mask[None, None]
    p = jax.nn.softmax(s, axis=-1)
    wv = jnp.einsum("bhqk,bhkd->bhqd", p, vc).transpose(0, 2, 1, 3).reshape(B, S, D)
    h1 = x + wv @ params["wproj"]
    xn2 = _layernorm(h1, params["n2w"], params["n2b"])
    gate = xn2 @ params["wgate"]
    up = xn2 @ params["wup"]
    ff = (gate * jax.nn.sigmoid(gate) * up) @ params["wdown"]
    return h1 + ff, kc, vc


# ---------------------------------------------------------------------------
if __name__ == "__main__":
    key = jax.random.PRNGKey(0)
    ks = jax.random.split(key, 8)

    # torch Linear weights are (out,in); store in x@W form
    def lin(k, din, dout):
        return (jax.random.normal(k, (dout, din), jnp.float32) * (din ** -0.5)).T

    params = {
        "wqkv":  lin(ks[0], D, 3 * D),       # (D, 3D)
        "wproj": lin(ks[1], D, D),           # (D, D)
        "wgate": lin(ks[2], D, FFD),         # (D, FFD)
        "wup":   lin(ks[3], D, FFD),         # (D, FFD)
        "wdown": lin(ks[4], FFD, D),         # (FFD, D)
        "n1w": jnp.ones((1, D), jnp.float32),
        "n1b": jnp.zeros((1, D), jnp.float32),
        "n2w": jnp.ones((1, D), jnp.float32),
        "n2b": jnp.zeros((1, D), jnp.float32),
    }

    x = jax.random.normal(ks[5], (B, S, D), jnp.float32)

    # prefill: positions 0..S-1 written into an empty cache of length MAX_T
    input_pos = jnp.arange(S, dtype=jnp.int32)

    # rotary tables for the current positions: (S, DH2)
    inv_freq = 1.0 / (10000.0 ** (jnp.arange(0, DH2, dtype=jnp.float32) * 2.0 / DH))
    angles = input_pos.astype(jnp.float32)[:, None] * inv_freq[None, :]
    cos, sin = jnp.cos(angles), jnp.sin(angles)

    # additive causal mask over the full cache: query i may attend to slot j <= pos[i]
    mask = jnp.where(jnp.arange(MAX_T)[None, :] <= input_pos[:, None],
                     0.0, -1e30).astype(jnp.float32)               # (S, MAX_T)

    k_cache = jnp.zeros((B, H, MAX_T, DH), jnp.float32)
    v_cache = jnp.zeros((B, H, MAX_T, DH), jnp.float32)

    out, kc, vc = transformer_block(x, input_pos, cos, sin, mask, params,
                                    k_cache, v_cache)
    out = jax.block_until_ready(out)

    ref_out, ref_kc, ref_vc = reference_block(x, input_pos, cos, sin, mask, params,
                                              k_cache, v_cache)
    assert out.shape == (B, S, D)
    # output tolerance covers the EUP approximate reciprocal in the softmax denominator
    assert jnp.allclose(out, ref_out, rtol=2e-2, atol=2e-2), "output mismatch"
    assert jnp.allclose(kc, ref_kc, rtol=2e-3, atol=2e-3), "k-cache mismatch"
    assert jnp.allclose(vc, ref_vc, rtol=2e-3, atol=2e-3), "v-cache mismatch"

    print("KERNEL_OK")
</pallas_src>

<mosaic_0001>
module attributes {stable_mosaic.version = 11 : i64} {
  func.func @fused_block_kernel(%arg0: i32, %arg1: memref<8xi32, #tpu.memory_space<smem>>, %arg2: memref<8x32xf32, #tpu.memory_space<vmem>>, %arg3: memref<1x32xf32, #tpu.memory_space<vmem>>, %arg4: memref<1x32xf32, #tpu.memory_space<vmem>>, %arg5: memref<32x160xf32, #tpu.memory_space<vmem>>, %arg6: memref<8x32xf32, #tpu.memory_space<vmem>>, %arg7: memref<8x32xf32, #tpu.memory_space<vmem>>, %arg8: memref<8x16xf32, #tpu.memory_space<vmem>>, %arg9: memref<32x32xf32, #tpu.memory_space<vmem>>, %arg10: memref<1x32xf32, #tpu.memory_space<vmem>>, %arg11: memref<1x32xf32, #tpu.memory_space<vmem>>, %arg12: memref<32x256xf32, #tpu.memory_space<vmem>>, %arg13: memref<128x32xf32, #tpu.memory_space<vmem>>, %arg14: memref<1x4x16x8xf32, #tpu.memory_space<vmem>>, %arg15: memref<1x4x16x8xf32, #tpu.memory_space<vmem>>, %arg16: memref<8x32xf32, #tpu.memory_space<vmem>>, %arg17: memref<1x4x16x8xf32, #tpu.memory_space<vmem>>, %arg18: memref<1x4x16x8xf32, #tpu.memory_space<vmem>>) attributes {dimension_semantics = [#tpu.dimension_semantics<parallel>], iteration_bounds = array<i64: 2>, scalar_prefetch = 1 : i64, scratch_operands = 0 : i64, tpu.core_type = #tpu.core_type<tc>, window_params = [{transform_indices = @transform_0, window_bounds = array<i64: 8, 32>}, {pipeline_mode = #tpu.pipeline_mode<synchronous>, transform_indices = @transform_1, window_bounds = array<i64: 1, 32>}, {pipeline_mode = #tpu.pipeline_mode<synchronous>, transform_indices = @transform_2, window_bounds = array<i64: 1, 32>}, {pipeline_mode = #tpu.pipeline_mode<synchronous>, transform_indices = @transform_3, window_bounds = array<i64: 32, 160>}, {pipeline_mode = #tpu.pipeline_mode<synchronous>, transform_indices = @transform_4, window_bounds = array<i64: 8, 32>}, {pipeline_mode = #tpu.pipeline_mode<synchronous>, transform_indices = @transform_5, window_bounds = array<i64: 8, 32>}, {pipeline_mode = #tpu.pipeline_mode<synchronous>, transform_indices = @transform_6, window_bounds = array<i64: 8, 16>}, {pipeline_mode = #tpu.pipeline_mode<synchronous>, transform_indices = @transform_7, window_bounds = array<i64: 32, 32>}, {pipeline_mode = #tpu.pipeline_mode<synchronous>, transform_indices = @transform_8, window_bounds = array<i64: 1, 32>}, {pipeline_mode = #tpu.pipeline_mode<synchronous>, transform_indices = @transform_9, window_bounds = array<i64: 1, 32>}, {pipeline_mode = #tpu.pipeline_mode<synchronous>, transform_indices = @transform_10, window_bounds = array<i64: 32, 256>}, {pipeline_mode = #tpu.pipeline_mode<synchronous>, transform_indices = @transform_11, window_bounds = array<i64: 128, 32>}, {transform_indices = @transform_12, window_bounds = array<i64: 1, 4, 16, 8>}, {transform_indices = @transform_13, window_bounds = array<i64: 1, 4, 16, 8>}, {transform_indices = @transform_14, window_bounds = array<i64: 8, 32>}, {transform_indices = @transform_15, window_bounds = array<i64: 1, 4, 16, 8>}, {transform_indices = @transform_16, window_bounds = array<i64: 1, 4, 16, 8>}]} {
    %c0 = arith.constant 0 : index
    %c0_0 = arith.constant 0 : index
    %0 = vector.load %arg2[%c0, %c0_0] : memref<8x32xf32, #tpu.memory_space<vmem>>, vector<8x32xf32>
    %c0_1 = arith.constant 0 : index
    %c0_2 = arith.constant 0 : index
    %1 = vector.load %arg3[%c0_1, %c0_2] : memref<1x32xf32, #tpu.memory_space<vmem>>, vector<1x32xf32>
    %c0_3 = arith.constant 0 : index
    %c0_4 = arith.constant 0 : index
    %2 = vector.load %arg4[%c0_3, %c0_4] : memref<1x32xf32, #tpu.memory_space<vmem>>, vector<1x32xf32>
    %cst = arith.constant dense<0.000000e+00> : vector<8xf32>
    %3 = vector.multi_reduction <add>, %0, %cst [1] : vector<8x32xf32> to vector<8xf32>
    %4 = vector.shape_cast %3 : vector<8xf32> to vector<8x1xf32>
    %cst_5 = arith.constant 3.200000e+01 : f32
    %5 = vector.broadcast %cst_5 : f32 to vector<8x1xf32>
    %6 = arith.divf %4, %5 : vector<8x1xf32>
    %7 = vector.broadcast %6 : vector<8x1xf32> to vector<8x32xf32>
    %8 = arith.subf %0, %7 : vector<8x32xf32>
    %9 = arith.mulf %8, %8 : vector<8x32xf32>
    %cst_6 = arith.constant dense<0.000000e+00> : vector<8xf32>
    %10 = vector.multi_reduction <add>, %9, %cst_6 [1] : vector<8x32xf32> to vector<8xf32>
    %11 = vector.shape_cast %10 : vector<8xf32> to vector<8x1xf32>
    %cst_7 = arith.constant 3.200000e+01 : f32
    %12 = vector.broadcast %cst_7 : f32 to vector<8x1xf32>
    %13 = arith.divf %11, %12 : vector<8x1xf32>
    %14 = vector.broadcast %6 : vector<8x1xf32> to vector<8x32xf32>
    %15 = arith.subf %0, %14 : vector<8x32xf32>
    %cst_8 = arith.constant 9.99999974E-6 : f32
    %16 = vector.broadcast %cst_8 : f32 to vector<8x1xf32>
    %17 = arith.addf %13, %16 : vector<8x1xf32>
    %18 = math.rsqrt %17 : vector<8x1xf32>
    %19 = vector.broadcast %18 : vector<8x1xf32> to vector<8x32xf32>
    %20 = arith.mulf %15, %19 : vector<8x32xf32>
    %21 = vector.broadcast %1 : vector<1x32xf32> to vector<8x32xf32>
    %22 = arith.mulf %20, %21 : vector<8x32xf32>
    %23 = vector.broadcast %2 : vector<1x32xf32> to vector<8x32xf32>
    %24 = arith.addf %22, %23 : vector<8x32xf32>
    %c0_9 = arith.constant 0 : index
    %c0_10 = arith.constant 0 : index
    %25 = vector.load %arg5[%c0_9, %c0_10] : memref<32x160xf32, #tpu.memory_space<vmem>>, vector<32x160xf32>
    %cst_11 = arith.constant dense<0.000000e+00> : vector<8x160xf32>
    %26 = tpu.matmul %24, %25, %cst_11 {dimension_numbers = #tpu.dot_dimension_numbers<[1], [0], [0], [1], [0, 0, 1, 1], [], []>} : vector<8x32xf32>, vector<32x160xf32>, vector<8x160xf32> -> vector<8x160xf32>
    %27 = vector.extract_strided_slice %26 {offsets = [0, 0], sizes = [8, 32], strides = [1, 1]} : vector<8x160xf32> to vector<8x32xf32>
    %28 = vector.extract_strided_slice %26 {offsets = [0, 32], sizes = [8, 32], strides = [1, 1]} : vector<8x160xf32> to vector<8x32xf32>
    %29 = vector.extract_strided_slice %26 {offsets = [0, 64], sizes = [8, 32], strides = [1, 1]} : vector<8x160xf32> to vector<8x32xf32>
    %30 = vector.extract_strided_slice %26 {offsets = [0, 96], sizes = [8, 32], strides = [1, 1]} : vector<8x160xf32> to vector<8x32xf32>
    %31 = vector.extract_strided_slice %26 {offsets = [0, 128], sizes = [8, 32], strides = [1, 1]} : vector<8x160xf32> to vector<8x32xf32>
    %c0_12 = arith.constant 0 : index
    %c0_13 = arith.constant 0 : index
    %32 = vector.load %arg6[%c0_12, %c0_13] : memref<8x32xf32, #tpu.memory_space<vmem>>, vector<8x32xf32>
    %c0_14 = arith.constant 0 : index
    %c0_15 = arith.constant 0 : index
    %33 = vector.load %arg7[%c0_14, %c0_15] : memref<8x32xf32, #tpu.memory_space<vmem>>, vector<8x32xf32>
    %34 = arith.mulf %27, %32 : vector<8x32xf32>
    %35 = arith.mulf %30, %33 : vector<8x32xf32>
    %36 = arith.addf %34, %35 : vector<8x32xf32>
    %37 = arith.mulf %28, %32 : vector<8x32xf32>
    %38 = arith.mulf %31, %33 : vector<8x32xf32>
    %39 = arith.addf %37, %38 : vector<8x32xf32>
    %40 = vector.extract_strided_slice %36 {offsets = [0, 0], sizes = [8, 8], strides = [1, 1]} : vector<8x32xf32> to vector<8x8xf32>
    %41 = vector.shape_cast %40 : vector<8x8xf32> to vector<1x8x8xf32>
    %42 = vector.extract_strided_slice %36 {offsets = [0, 8], sizes = [8, 8], strides = [1, 1]} : vector<8x32xf32> to vector<8x8xf32>
    %43 = vector.shape_cast %42 : vector<8x8xf32> to vector<1x8x8xf32>
    %44 = vector.extract_strided_slice %36 {offsets = [0, 16], sizes = [8, 8], strides = [1, 1]} : vector<8x32xf32> to vector<8x8xf32>
    %45 = vector.shape_cast %44 : vector<8x8xf32> to vector<1x8x8xf32>
    %46 = vector.extract_strided_slice %36 {offsets = [0, 24], sizes = [8, 8], strides = [1, 1]} : vector<8x32xf32> to vector<8x8xf32>
    %47 = vector.shape_cast %46 : vector<8x8xf32> to vector<1x8x8xf32>
    %48 = tpu.concatenate %41, %43, %45, %47 in 0 : vector<1x8x8xf32>, vector<1x8x8xf32>, vector<1x8x8xf32>, vector<1x8x8xf32> -> vector<4x8x8xf32>
    %49 = vector.extract_strided_slice %39 {offsets = [0, 0], sizes = [8, 8], strides = [1, 1]} : vector<8x32xf32> to vector<8x8xf32>
    %50 = vector.shape_cast %49 : vector<8x8xf32> to vector<1x8x8xf32>
    %51 = vector.extract_strided_slice %39 {offsets = [0, 8], sizes = [8, 8], strides = [1, 1]} : vector<8x32xf32> to vector<8x8xf32>
    %52 = vector.shape_cast %51 : vector<8x8xf32> to vector<1x8x8xf32>
    %53 = vector.extract_strided_slice %39 {offsets = [0, 16], sizes = [8, 8], strides = [1, 1]} : vector<8x32xf32> to vector<8x8xf32>
    %54 = vector.shape_cast %53 : vector<8x8xf32> to vector<1x8x8xf32>
    %55 = vector.extract_strided_slice %39 {offsets = [0, 24], sizes = [8, 8], strides = [1, 1]} : vector<8x32xf32> to vector<8x8xf32>
    %56 = vector.shape_cast %55 : vector<8x8xf32> to vector<1x8x8xf32>
    %57 = tpu.concatenate %50, %52, %54, %56 in 0 : vector<1x8x8xf32>, vector<1x8x8xf32>, vector<1x8x8xf32>, vector<1x8x8xf32> -> vector<4x8x8xf32>
    %58 = vector.extract_strided_slice %29 {offsets = [0, 0], sizes = [8, 8], strides = [1, 1]} : vector<8x32xf32> to vector<8x8xf32>
    %59 = vector.shape_cast %58 : vector<8x8xf32> to vector<1x8x8xf32>
    %60 = vector.extract_strided_slice %29 {offsets = [0, 8], sizes = [8, 8], strides = [1, 1]} : vector<8x32xf32> to vector<8x8xf32>
    %61 = vector.shape_cast %60 : vector<8x8xf32> to vector<1x8x8xf32>
    %62 = vector.extract_strided_slice %29 {offsets = [0, 16], sizes = [8, 8], strides = [1, 1]} : vector<8x32xf32> to vector<8x8xf32>
    %63 = vector.shape_cast %62 : vector<8x8xf32> to vector<1x8x8xf32>
    %64 = vector.extract_strided_slice %29 {offsets = [0, 24], sizes = [8, 8], strides = [1, 1]} : vector<8x32xf32> to vector<8x8xf32>
    %65 = vector.shape_cast %64 : vector<8x8xf32> to vector<1x8x8xf32>
    %66 = tpu.concatenate %59, %61, %63, %65 in 0 : vector<1x8x8xf32>, vector<1x8x8xf32>, vector<1x8x8xf32>, vector<1x8x8xf32> -> vector<4x8x8xf32>
    %c0_16 = arith.constant 0 : index
    %67 = memref.load %arg1[%c0_16] : memref<8xi32, #tpu.memory_space<smem>>
    %c0_17 = arith.constant 0 : index
    %c0_18 = arith.constant 0 : index
    %c0_19 = arith.constant 0 : index
    %c0_20 = arith.constant 0 : index
    %68 = vector.load %arg14[%c0_17, %c0_18, %c0_19, %c0_20] : memref<1x4x16x8xf32, #tpu.memory_space<vmem>>, vector<1x4x16x8xf32>
    %69 = vector.shape_cast %68 : vector<1x4x16x8xf32> to vector<4x16x8xf32>
    %c0_21 = arith.constant 0 : index
    %c0_22 = arith.constant 0 : index
    %c0_23 = arith.constant 0 : index
    %c0_24 = arith.constant 0 : index
    %70 = vector.load %arg17[%c0_21, %c0_22, %c0_23, %c0_24] : memref<1x4x16x8xf32, #tpu.memory_space<vmem>>, vector<1x4x16x8xf32>
    %71 = vector.shape_cast %70 : vector<1x4x16x8xf32> to vector<4x16x8xf32>
    %72 = vector.shape_cast %69 : vector<4x16x8xf32> to vector<1x4x16x8xf32>
    tpu.vector_store %arg17[%c0_21, %c0_22, %c0_23, %c0_24], %72 {strides = array<i32>} : memref<1x4x16x8xf32, #tpu.memory_space<vmem>>, vector<1x4x16x8xf32>,
    %c0_25 = arith.constant 0 : index
    %c0_26 = arith.constant 0 : index
    %c0_27 = arith.constant 0 : index
    %c0_28 = arith.constant 0 : index
    %73 = vector.load %arg15[%c0_25, %c0_26, %c0_27, %c0_28] : memref<1x4x16x8xf32, #tpu.memory_space<vmem>>, vector<1x4x16x8xf32>
    %74 = vector.shape_cast %73 : vector<1x4x16x8xf32> to vector<4x16x8xf32>
    %c0_29 = arith.constant 0 : index
    %c0_30 = arith.constant 0 : index
    %c0_31 = arith.constant 0 : index
    %c0_32 = arith.constant 0 : index
    %75 = vector.load %arg18[%c0_29, %c0_30, %c0_31, %c0_32] : memref<1x4x16x8xf32, #tpu.memory_space<vmem>>, vector<1x4x16x8xf32>
    %76 = vector.shape_cast %75 : vector<1x4x16x8xf32> to vector<4x16x8xf32>
    %77 = vector.shape_cast %74 : vector<4x16x8xf32> to vector<1x4x16x8xf32>
    tpu.vector_store %arg18[%c0_29, %c0_30, %c0_31, %c0_32], %77 {strides = array<i32>} : memref<1x4x16x8xf32, #tpu.memory_space<vmem>>, vector<1x4x16x8xf32>,
    %c0_33 = arith.constant 0 : index
    %c0_34 = arith.constant 0 : index
    %78 = arith.index_cast %67 : i32 to index
    %c0_35 = arith.constant 0 : index
    %79 = vector.load %arg17[%c0_33, %c0_34, %78, %c0_35] : memref<1x4x16x8xf32, #tpu.memory_space<vmem>>, vector<1x4x8x8xf32>
    %80 = vector.shape_cast %79 : vector<1x4x8x8xf32> to vector<4x8x8xf32>
    %81 = vector.shape_cast %57 : vector<4x8x8xf32> to vector<1x4x8x8xf32>
    tpu.vector_store %arg17[%c0_33, %c0_34, %78, %c0_35], %81 {strides = array<i32>} : memref<1x4x16x8xf32, #tpu.memory_space<vmem>>, vector<1x4x8x8xf32>,
    %c0_36 = arith.constant 0 : index
    %c0_37 = arith.constant 0 : index
    %82 = arith.index_cast %67 : i32 to index
    %c0_38 = arith.constant 0 : index
    %83 = vector.load %arg18[%c0_36, %c0_37, %82, %c0_38] : memref<1x4x16x8xf32, #tpu.memory_space<vmem>>, vector<1x4x8x8xf32>
    %84 = vector.shape_cast %83 : vector<1x4x8x8xf32> to vector<4x8x8xf32>
    %85 = vector.shape_cast %66 : vector<4x8x8xf32> to vector<1x4x8x8xf32>
    tpu.vector_store %arg18[%c0_36, %c0_37, %82, %c0_38], %85 {strides = array<i32>} : memref<1x4x16x8xf32, #tpu.memory_space<vmem>>, vector<1x4x8x8xf32>,
    %c0_39 = arith.constant 0 : index
    %c0_40 = arith.constant 0 : index
    %c0_41 = arith.constant 0 : index
    %c0_42 = arith.constant 0 : index
    %86 = vector.load %arg17[%c0_39, %c0_40, %c0_41, %c0_42] : memref<1x4x16x8xf32, #tpu.memory_space<vmem>>, vector<1x4x16x8xf32>
    %87 = vector.shape_cast %86 : vector<1x4x16x8xf32> to vector<4x16x8xf32>
    %c0_43 = arith.constant 0 : index
    %c0_44 = arith.constant 0 : index
    %c0_45 = arith.constant 0 : index
    %c0_46 = arith.constant 0 : index
    %88 = vector.load %arg18[%c0_43, %c0_44, %c0_45, %c0_46] : memref<1x4x16x8xf32, #tpu.memory_space<vmem>>, vector<1x4x16x8xf32>
    %89 = vector.shape_cast %88 : vector<1x4x16x8xf32> to vector<4x16x8xf32>
    %cst_47 = arith.constant dense<0.000000e+00> : vector<4x8x16xf32>
    %90 = tpu.matmul %48, %87, %cst_47 {dimension_numbers = #tpu.dot_dimension_numbers<[2], [2], [1], [1], [0, 0, 0, 1, 1, 1], [0], [0]>} : vector<4x8x8xf32>, vector<4x16x8xf32>, vector<4x8x16xf32> -> vector<4x8x16xf32>
    %cst_48 = arith.constant 0.353553385 : f32
    %91 = vector.broadcast %cst_48 : f32 to vector<4x8x16xf32>
    %92 = arith.mulf %90, %91 : vector<4x8x16xf32>
    %c0_49 = arith.constant 0 : index
    %c0_50 = arith.constant 0 : index
    %93 = vector.load %arg8[%c0_49, %c0_50] : memref<8x16xf32, #tpu.memory_space<vmem>>, vector<8x16xf32>
    %94 = vector.shape_cast %93 : vector<8x16xf32> to vector<1x8x16xf32>
    %95 = vector.broadcast %94 : vector<1x8x16xf32> to vector<4x8x16xf32>
    %96 = arith.addf %92, %95 : vector<4x8x16xf32>
    %cst_51 = arith.constant dense<0xFF800000> : vector<4x8xf32>
    %97 = vector.multi_reduction <maximumf>, %96, %cst_51 [2] : vector<4x8x16xf32> to vector<4x8xf32>
    %98 = vector.shape_cast %97 : vector<4x8xf32> to vector<4x8x1xf32>
    %99 = vector.broadcast %98 : vector<4x8x1xf32> to vector<4x8x16xf32>
    %100 = arith.subf %96, %99 : vector<4x8x16xf32>
    %101 = math.exp %100 : vector<4x8x16xf32>
    %cst_52 = arith.constant dense<0.000000e+00> : vector<4x8xf32>
    %102 = vector.multi_reduction <add>, %101, %cst_52 [2] : vector<4x8x16xf32> to vector<4x8xf32>
    %103 = vector.shape_cast %102 : vector<4x8xf32> to vector<4x8x1xf32>
    %104 = tpu.reciprocal %103 {approx = true} : vector<4x8x1xf32> -> vector<4x8x1xf32>
    %105 = vector.broadcast %104 : vector<4x8x1xf32> to vector<4x8x16xf32>
    %106 = arith.mulf %101, %105 : vector<4x8x16xf32>
    %cst_53 = arith.constant dense<0.000000e+00> : vector<4x8x8xf32>
    %107 = tpu.matmul %106, %89, %cst_53 {dimension_numbers = #tpu.dot_dimension_numbers<[2], [1], [1], [2], [0, 0, 0, 1, 1, 2], [0], [0]>} : vector<4x8x16xf32>, vector<4x16x8xf32>, vector<4x8x8xf32> -> vector<4x8x8xf32>
    %108 = vector.extract_strided_slice %107 {offsets = [0, 0, 0], sizes = [1, 8, 8], strides = [1, 1, 1]} : vector<4x8x8xf32> to vector<1x8x8xf32>
    %109 = vector.shape_cast %108 : vector<1x8x8xf32> to vector<8x8xf32>
    %110 = vector.extract_strided_slice %107 {offsets = [1, 0, 0], sizes = [1, 8, 8], strides = [1, 1, 1]} : vector<4x8x8xf32> to vector<1x8x8xf32>
    %111 = vector.shape_cast %110 : vector<1x8x8xf32> to vector<8x8xf32>
    %112 = vector.extract_strided_slice %107 {offsets = [2, 0, 0], sizes = [1, 8, 8], strides = [1, 1, 1]} : vector<4x8x8xf32> to vector<1x8x8xf32>
    %113 = vector.shape_cast %112 : vector<1x8x8xf32> to vector<8x8xf32>
    %114 = vector.extract_strided_slice %107 {offsets = [3, 0, 0], sizes = [1, 8, 8], strides = [1, 1, 1]} : vector<4x8x8xf32> to vector<1x8x8xf32>
    %115 = vector.shape_cast %114 : vector<1x8x8xf32> to vector<8x8xf32>
    %116 = tpu.concatenate %109, %111, %113, %115 in 1 : vector<8x8xf32>, vector<8x8xf32>, vector<8x8xf32>, vector<8x8xf32> -> vector<8x32xf32>
    %c0_54 = arith.constant 0 : index
    %c0_55 = arith.constant 0 : index
    %117 = vector.load %arg9[%c0_54, %c0_55] : memref<32x32xf32, #tpu.memory_space<vmem>>, vector<32x32xf32>
    %cst_56 = arith.constant dense<0.000000e+00> : vector<8x32xf32>
    %118 = tpu.matmul %116, %117, %cst_56 {dimension_numbers = #tpu.dot_dimension_numbers<[1], [0], [0], [1], [0, 0, 1, 1], [], []>} : vector<8x32xf32>, vector<32x32xf32>, vector<8x32xf32> -> vector<8x32xf32>
    %119 = arith.addf %0, %118 : vector<8x32xf32>
    %c0_57 = arith.constant 0 : index
    %c0_58 = arith.constant 0 : index
    %120 = vector.load %arg10[%c0_57, %c0_58] : memref<1x32xf32, #tpu.memory_space<vmem>>, vector<1x32xf32>
    %c0_59 = arith.constant 0 : index
    %c0_60 = arith.constant 0 : index
    %121 = vector.load %arg11[%c0_59, %c0_60] : memref<1x32xf32, #tpu.memory_space<vmem>>, vector<1x32xf32>
    %cst_61 = arith.constant dense<0.000000e+00> : vector<8xf32>
    %122 = vector.multi_reduction <add>, %119, %cst_61 [1] : vector<8x32xf32> to vector<8xf32>
    %123 = vector.shape_cast %122 : vector<8xf32> to vector<8x1xf32>
    %cst_62 = arith.constant 3.200000e+01 : f32
    %124 = vector.broadcast %cst_62 : f32 to vector<8x1xf32>
    %125 = arith.divf %123, %124 : vector<8x1xf32>
    %126 = vector.broadcast %125 : vector<8x1xf32> to vector<8x32xf32>
    %127 = arith.subf %119, %126 : vector<8x32xf32>
    %128 = arith.mulf %127, %127 : vector<8x32xf32>
    %cst_63 = arith.constant dense<0.000000e+00> : vector<8xf32>
    %129 = vector.multi_reduction <add>, %128, %cst_63 [1] : vector<8x32xf32> to vector<8xf32>
    %130 = vector.shape_cast %129 : vector<8xf32> to vector<8x1xf32>
    %cst_64 = arith.constant 3.200000e+01 : f32
    %131 = vector.broadcast %cst_64 : f32 to vector<8x1xf32>
    %132 = arith.divf %130, %131 : vector<8x1xf32>
    %133 = vector.broadcast %125 : vector<8x1xf32> to vector<8x32xf32>
    %134 = arith.subf %119, %133 : vector<8x32xf32>
    %cst_65 = arith.constant 9.99999974E-6 : f32
    %135 = vector.broadcast %cst_65 : f32 to vector<8x1xf32>
    %136 = arith.addf %132, %135 : vector<8x1xf32>
    %137 = math.rsqrt %136 : vector<8x1xf32>
    %138 = vector.broadcast %137 : vector<8x1xf32> to vector<8x32xf32>
    %139 = arith.mulf %134, %138 : vector<8x32xf32>
    %140 = vector.broadcast %120 : vector<1x32xf32> to vector<8x32xf32>
    %141 = arith.mulf %139, %140 : vector<8x32xf32>
    %142 = vector.broadcast %121 : vector<1x32xf32> to vector<8x32xf32>
    %143 = arith.addf %141, %142 : vector<8x32xf32>
    %c0_66 = arith.constant 0 : index
    %c0_67 = arith.constant 0 : index
    %144 = vector.load %arg12[%c0_66, %c0_67] : memref<32x256xf32, #tpu.memory_space<vmem>>, vector<32x256xf32>
    %cst_68 = arith.constant dense<0.000000e+00> : vector<8x256xf32>
    %145 = tpu.matmul %143, %144, %cst_68 {dimension_numbers = #tpu.dot_dimension_numbers<[1], [0], [0], [1], [0, 0, 1, 1], [], []>} : vector<8x32xf32>, vector<32x256xf32>, vector<8x256xf32> -> vector<8x256xf32>
    %146 = vector.extract_strided_slice %145 {offsets = [0, 0], sizes = [8, 128], strides = [1, 1]} : vector<8x256xf32> to vector<8x128xf32>
    %147 = vector.extract_strided_slice %145 {offsets = [0, 128], sizes = [8, 128], strides = [1, 1]} : vector<8x256xf32> to vector<8x128xf32>
    %148 = arith.negf %146 : vector<8x128xf32>
    %149 = math.exp %148 : vector<8x128xf32>
    %cst_69 = arith.constant 1.000000e+00 : f32
    %150 = vector.broadcast %cst_69 : f32 to vector<8x128xf32>
    %151 = arith.addf %150, %149 : vector<8x128xf32>
    %152 = arith.divf %150, %151 : vector<8x128xf32>
    %153 = arith.mulf %146, %152 : vector<8x128xf32>
    %154 = arith.mulf %153, %147 : vector<8x128xf32>
    %c0_70 = arith.constant 0 : index
    %c0_71 = arith.constant 0 : index
    %155 = vector.load %arg13[%c0_70, %c0_71] : memref<128x32xf32, #tpu.memory_space<vmem>>, vector<128x32xf32>
    %cst_72 = arith.constant dense<0.000000e+00> : vector<8x32xf32>
    %156 = tpu.matmul %154, %155, %cst_72 {dimension_numbers = #tpu.dot_dimension_numbers<[1], [0], [0], [1], [0, 0, 1, 1], [], []>} : vector<8x128xf32>, vector<128x32xf32>, vector<8x32xf32> -> vector<8x32xf32>
    %157 = arith.addf %119, %156 : vector<8x32xf32>
    %c0_73 = arith.constant 0 : index
    %c0_74 = arith.constant 0 : index
    %158 = vector.load %arg16[%c0_73, %c0_74] : memref<8x32xf32, #tpu.memory_space<vmem>>, vector<8x32xf32>
    tpu.vector_store %arg16[%c0_73, %c0_74], %157 {strides = array<i32>} : memref<8x32xf32, #tpu.memory_space<vmem>>, vector<8x32xf32>,
    return
  }
  func.func @transform_0(%arg0: i32, %arg1: memref<8xi32, #tpu.memory_space<smem>>) -> (i32, i32) {
    %c0_i32 = arith.constant 0 : i32
    %c0_i32_0 = arith.constant 0 : i32
    return %arg0, %c0_i32 : i32, i32
  }
  func.func @transform_1(%arg0: i32, %arg1: memref<8xi32, #tpu.memory_space<smem>>) -> (i32, i32) {
    %c0_i32 = arith.constant 0 : i32
    %c0_i32_0 = arith.constant 0 : i32
    %c0_i32_1 = arith.constant 0 : i32
    return %c0_i32, %c0_i32_0 : i32, i32
  }
  func.func @transform_2(%arg0: i32, %arg1: memref<8xi32, #tpu.memory_space<smem>>) -> (i32, i32) {
    %c0_i32 = arith.constant 0 : i32
    %c0_i32_0 = arith.constant 0 : i32
    %c0_i32_1 = arith.constant 0 : i32
    return %c0_i32, %c0_i32_0 : i32, i32
  }
  func.func @transform_3(%arg0: i32, %arg1: memref<8xi32, #tpu.memory_space<smem>>) -> (i32, i32) {
    %c0_i32 = arith.constant 0 : i32
    %c0_i32_0 = arith.constant 0 : i32
    %c0_i32_1 = arith.constant 0 : i32
    return %c0_i32, %c0_i32_0 : i32, i32
  }
  func.func @transform_4(%arg0: i32, %arg1: memref<8xi32, #tpu.memory_space<smem>>) -> (i32, i32) {
    %c0_i32 = arith.constant 0 : i32
    %c0_i32_0 = arith.constant 0 : i32
    %c0_i32_1 = arith.constant 0 : i32
    return %c0_i32, %c0_i32_0 : i32, i32
  }
  func.func @transform_5(%arg0: i32, %arg1: memref<8xi32, #tpu.memory_space<smem>>) -> (i32, i32) {
    %c0_i32 = arith.constant 0 : i32
    %c0_i32_0 = arith.constant 0 : i32
    %c0_i32_1 = arith.constant 0 : i32
    return %c0_i32, %c0_i32_0 : i32, i32
  }
  func.func @transform_6(%arg0: i32, %arg1: memref<8xi32, #tpu.memory_space<smem>>) -> (i32, i32) {
    %c0_i32 = arith.constant 0 : i32
    %c0_i32_0 = arith.constant 0 : i32
    %c0_i32_1 = arith.constant 0 : i32
    return %c0_i32, %c0_i32_0 : i32, i32
  }
  func.func @transform_7(%arg0: i32, %arg1: memref<8xi32, #tpu.memory_space<smem>>) -> (i32, i32) {
    %c0_i32 = arith.constant 0 : i32
    %c0_i32_0 = arith.constant 0 : i32
    %c0_i32_1 = arith.constant 0 : i32
    return %c0_i32, %c0_i32_0 : i32, i32
  }
  func.func @transform_8(%arg0: i32, %arg1: memref<8xi32, #tpu.memory_space<smem>>) -> (i32, i32) {
    %c0_i32 = arith.constant 0 : i32
    %c0_i32_0 = arith.constant 0 : i32
    %c0_i32_1 = arith.constant 0 : i32
    return %c0_i32, %c0_i32_0 : i32, i32
  }
  func.func @transform_9(%arg0: i32, %arg1: memref<8xi32, #tpu.memory_space<smem>>) -> (i32, i32) {
    %c0_i32 = arith.constant 0 : i32
    %c0_i32_0 = arith.constant 0 : i32
    %c0_i32_1 = arith.constant 0 : i32
    return %c0_i32, %c0_i32_0 : i32, i32
  }
  func.func @transform_10(%arg0: i32, %arg1: memref<8xi32, #tpu.memory_space<smem>>) -> (i32, i32) {
    %c0_i32 = arith.constant 0 : i32
    %c0_i32_0 = arith.constant 0 : i32
    %c0_i32_1 = arith.constant 0 : i32
    return %c0_i32, %c0_i32_0 : i32, i32
  }
  func.func @transform_11(%arg0: i32, %arg1: memref<8xi32, #tpu.memory_space<smem>>) -> (i32, i32) {
    %c0_i32 = arith.constant 0 : i32
    %c0_i32_0 = arith.constant 0 : i32
    %c0_i32_1 = arith.constant 0 : i32
    return %c0_i32, %c0_i32_0 : i32, i32
  }
  func.func @transform_12(%arg0: i32, %arg1: memref<8xi32, #tpu.memory_space<smem>>) -> (i32, i32, i32, i32) {
    %c0_i32 = arith.constant 0 : i32
    %c0_i32_0 = arith.constant 0 : i32
    %c0_i32_1 = arith.constant 0 : i32
    %c0_i32_2 = arith.constant 0 : i32
    return %arg0, %c0_i32, %c0_i32_0, %c0_i32_1 : i32, i32, i32, i32
  }
  func.func @transform_13(%arg0: i32, %arg1: memref<8xi32, #tpu.memory_space<smem>>) -> (i32, i32, i32, i32) {
    %c0_i32 = arith.constant 0 : i32
    %c0_i32_0 = arith.constant 0 : i32
    %c0_i32_1 = arith.constant 0 : i32
    %c0_i32_2 = arith.constant 0 : i32
    return %arg0, %c0_i32, %c0_i32_0, %c0_i32_1 : i32, i32, i32, i32
  }
  func.func @transform_14(%arg0: i32, %arg1: memref<8xi32, #tpu.memory_space<smem>>) -> (i32, i32) {
    %c0_i32 = arith.constant 0 : i32
    %c0_i32_0 = arith.constant 0 : i32
    return %arg0, %c0_i32 : i32, i32
  }
  func.func @transform_15(%arg0: i32, %arg1: memref<8xi32, #tpu.memory_space<smem>>) -> (i32, i32, i32, i32) {
    %c0_i32 = arith.constant 0 : i32
    %c0_i32_0 = arith.constant 0 : i32
    %c0_i32_1 = arith.constant 0 : i32
    %c0_i32_2 = arith.constant 0 : i32
    return %arg0, %c0_i32, %c0_i32_0, %c0_i32_1 : i32, i32, i32, i32
  }
  func.func @transform_16(%arg0: i32, %arg1: memref<8xi32, #tpu.memory_space<smem>>) -> (i32, i32, i32, i32) {
    %c0_i32 = arith.constant 0 : i32
    %c0_i32_0 = arith.constant 0 : i32
    %c0_i32_1 = arith.constant 0 : i32
    %c0_i32_2 = arith.constant 0 : i32
    return %arg0, %c0_i32, %c0_i32_0, %c0_i32_1 : i32, i32, i32, i32
  }
}

</mosaic_0001>

<bundles_post_ra>
// kernel: neg.1
= control target key start
LH: loop header
LB: loop body
LE: loop exit
PB: predicated region body
PF: predicated region fallthrough
CT: control target
= control target key end

     0   :  { %s24_s0 = inlined_call_operand.vmem [shape: f32[8,4], index: 0, kind: input, shape index: {}]   ;;  %s25_s1 = inlined_call_operand.vmem [shape: f32[8,4], index: 1, kind: output, shape index: {}]  }
   0x1   :  { %v2_v0 = vld [vmem:[%s24_s0] sm:$0xf] }
   0x2   :  { %v5_v1 = vxor.u32 2147483648, %v2_v0 }
   0x4   :  { %7 = vst [vmem:[%s25_s1] sm:$0xf] %v5_v1 }

// kernel: tile.14
= control target key start
LH: loop header
LB: loop body
LE: loop exit
PB: predicated region body
PF: predicated region fallthrough
CT: control target
= control target key end

     0   :  { %vm36_vm0 = vcmask 1047556   ;;  %s81_s22 = smov 8   ;;  %s82_s23 = smov 16   ;;  %vm38_vm1 = vcmask 64512   ;;  %vm48_vm2 = vcmask 261312   ;;  %vm58_vm3 = vcmask 195712   ;;  %s133_s0 = inlined_call_operand.vmem [shape: f32[8,4,8], index: 0, kind: input, shape index: {}]   ;;  %s134_s1 = inlined_call_operand.vmem [shape: f32[8,32], index: 1, kind: output, shape index: {}]  }
   0x1   :  { %v70_v0 = vld [vmem:[%s133_s0 + $0x1c] sm:$0xf]  ;;  %v71_v1 = vld [vmem:[%s133_s0 + $0x18] sm:$0xf]  ;;  %v72_v2 = vld [vmem:[%s133_s0 + $0x14] sm:$0xf] }
   0x2   :  { %7 = vst [vmem:[#allocation0 + $0x38] sm:$0xf] %v70_v0  ;;  %v73_v3 = vld [vmem:[%s133_s0 + $0x10] sm:$0xf]  ;;  %v74_v4 = vld [vmem:[%s133_s0 + $0xc] sm:$0xf] }
   0x3   :  { %11 = vst [vmem:[#allocation0 + $0x30] sm:$0xf] %v71_v1  ;;  %v75_v5 = vld [vmem:[%s133_s0 + $0x8] sm:$0xf]  ;;  %v76_v6 = vld [vmem:[%s133_s0 + $0x4] sm:$0xf] }
   0x4   :  { %15 = vst [vmem:[#allocation0 + $0x28] sm:$0xf] %v72_v2  ;;  %v32_v7 = vld [vmem:[%s133_s0] sm:$0xf]  ;;  %s80_s0 = smov 24   ;;  %vm68_vm4 = vcmask 130112  }
   0x5   :  { %19 = vst [vmem:[#allocation0 + $0x20] sm:$0xf] %v73_v3 }
   0x6   :  { %23 = vst [vmem:[#allocation0 + $0x18] sm:$0xf] %v74_v4 }
   0x7   :  { %27 = vst [vmem:[#allocation0 + $0x10] sm:$0xf] %v75_v5 }
   0x8   :  { %31 = vst [vmem:[#allocation0 + $0x8] sm:$0xf] %v76_v6 }
   0x9   :  { %33 = vst [vmem:[#allocation0] sm:$0xf] %v32_v7 }
   0xc   :  { %v43_v8 = vld [vmem:[#allocation0 + $0x3] ss:$8 sm:$0xf0]   ;;  %v63_v9 = vld [vmem:[#allocation0 + $0x1] ss:$8 sm:$0xf0]  }
   0xd   :  { %v53_v15 = vld [vmem:[#allocation0 + $0x2] ss:$8 sm:$0xf0]   ;;  %v35_v18 = vld [vmem:[#allocation0] ss:$8 sm:$0xf0]  }
  0x10   :  { %v41_v10 = vld [vmem:[#allocation0 + $0x3] ss:$8 sm:$0xf]   ;;  %v61_v12 = vld [vmem:[#allocation0 + $0x1] ss:$8 sm:$0xf]  }
  0x11   :  { %v45_v11 = vsel %vm36_vm0, %v43_v8, %v41_v10  ;;  %v65_v13 = vsel %vm36_vm0, %v63_v9, %v61_v12  ;;  %v51_v14 = vld [vmem:[#allocation0 + $0x2] ss:$8 sm:$0xf]   ;;  %v34_v17 = vld [vmem:[#allocation0] ss:$8 sm:$0xf]  }
  0x12   :  { %46 = vrot.lane.b32.xlu0 %v45_v11, %s80_s0  ;;  %66 = vrot.lane.b32.xlu1 %v65_v13, %s81_s22  ;;  %v55_v16 = vsel %vm36_vm0, %v53_v15, %v51_v14  ;;  %v37_v19 = vsel %vm36_vm0, %v35_v18, %v34_v17 }
  0x13   :  { %39 = vst.msk [vmem:[%s134_s1] sm:$0xff] %vm38_vm1, %v37_v19  }
  0x1a   :  { %56 = vrot.lane.b32.xlu0 %v55_v16, %s82_s23 }
  0x84   :  { %v47_v20 = vpop.permute.xlu0 %46   ;;  %v67_v21 = vpop.permute.xlu1 %66  }
  0x85   :  { %49 = vst.msk [vmem:[%s134_s1] sm:$0xff] %vm48_vm2, %v47_v20  }
  0x8c   :  { %v57_v22 = vpop.permute.xlu0 %56  }
  0x8d   :  { %59 = vst.msk [vmem:[%s134_s1] sm:$0xff] %vm58_vm3, %v57_v22  }
  0x8e   :  { %69 = vst.msk [vmem:[%s134_s1] sm:$0xff] %vm68_vm4, %v67_v21  }

// kernel: transformer_block.1
= control target key start
LH: loop header
LB: loop body
LE: loop exit
PB: predicated region body
PF: predicated region fallthrough
CT: control target
= control target key end

     0   :  { %s1625_s27 = smov [#allocation3]   ;;  %s2102_s0 = inlined_call_operand.vmem [shape: s32[8], index: 0, kind: input, shape index: {}]   ;;  %s2103_s1 = inlined_call_operand.vmem [shape: f32[16,32], index: 1, kind: input, shape index: {}]   ;;  %s2104_s2 = inlined_call_operand.vmem [shape: f32[1,32], index: 2, kind: input, shape index: {}]   ;;  %s2105_s3 = inlined_call_operand.vmem [shape: f32[1,32], index: 3, kind: input, shape index: {}]   ;;  %s2106_s4 = inlined_call_operand.vmem [shape: f32[32,160], index: 4, kind: input, shape index: {}]   ;;  %s2107_s5 = inlined_call_operand.vmem [shape: f32[8,32], index: 5, kind: input, shape index: {}]   ;;  %s2108_s6 = inlined_call_operand.vmem [shape: f32[8,32], index: 6, kind: input, shape index: {}]   ;;  %s2109_s7 = inlined_call_operand.vmem [shape: f32[8,16], index: 7, kind: input, shape index: {}]   ;;  %s2110_s8 = inlined_call_operand.vmem [shape: f32[32,32], index: 8, kind: input, shape index: {}]   ;;  %s2111_s9 = inlined_call_operand.vmem [shape: f32[1,32], index: 9, kind: input, shape index: {}]   ;;  %s2112_s10 = inlined_call_operand.vmem [shape: f32[1,32], index: 10, kind: input, shape index: {}]   ;;  %s2113_s11 = inlined_call_operand.vmem [shape: f32[32,256], index: 11, kind: input, shape index: {}]   ;;  %s2114_s12 = inlined_call_operand.vmem [shape: f32[128,32], index: 12, kind: input, shape index: {}]   ;;  %s2115_s13 = inlined_call_operand.vmem [shape: f32[2,4,16,8], index: 13, kind: input, shape index: {}, may-alias: {13,16}]   ;;  %s2116_s14 = inlined_call_operand.vmem [shape: f32[2,4,16,8], index: 14, kind: input, shape index: {}, may-alias: {14,17}]   ;;  %s2117_s15 = inlined_call_operand.hbm [shape: f32[16,32], index: 15, kind: output, shape index: {0}]   ;;  %s2118_s16 = inlined_call_operand.vmem [shape: f32[2,4,16,8], index: 16, kind: output, shape index: {1}, may-alias: {13,16}]   ;;  %s2119_s17 = inlined_call_operand.vmem [shape: f32[2,4,16,8], index: 17, kind: output, shape index: {2}, may-alias: {14,17}]  }
   0x1   :  { %2126 = sst [smem:[#allocation14_spill]] %s2102_s0 }
   0x2   :  { %2127 = sst [smem:[#allocation15_spill]] %s2103_s1 }
   0x3   :  { %2128 = sst [smem:[#allocation16_spill]] %s2112_s10 }
   0x4   :  { %s2129_s26 = sld [smem:[#allocation14_spill]] }
   0xa   :  { %s24_s10 = sshll.u32 %s2129_s26, 4  ;;  %s25_s10 = int_to_ptr.vmem [resolvable:$true] %s24_s10 }
   0xb   :  { %27 = dma.vmem_to_smem %s25_s10, 16, %s1625_s27, [#allocation2] }
   0xc   :  { %1603 = dma.done.wait [#allocation2], 16 }
   0xd   :  { %1604 = vsyncadd [#allocation2], 4294967280 }
   0xe   :  { %30 = sfence }
   0xf   :  { %31 = vsyncpa [#allocation5], 0 }
  0x10   :  { %33 = vsyncpa [#allocation5 + $0x1], 0  ;;  %s1729_s28 = smov 0   ;;  %s1731_s29 = smov 0  }
  0x11   :  { %s1733_s0 = smov 0   ;;  %s1735_s30 = smov 0  }
  0x12 LB: > { %2130 = sst [smem:[#allocation8_spill]] %s1611_s28  ;;  %s1750_s10 = sadd.s32 4294967295, %s1623_s30   ;;  %s1623_s30 = sphi %s1735_s30, %s2143_s30   ;;  %s1619_s0 = sphi %s1733_s0, %s2145_s0   ;;  %s1615_s29 = sphi %s1731_s29, %s2147_s29   ;;  %s1611_s28 = sphi %s1729_s28, %s2146_s28  }
  0x13   : > { %2131 = sst [smem:[#allocation9_spill]] %s1619_s0  ;;  %s1423_s18 = sadd.s32 4294967294, %s1623_s30  }
  0x14   : > { %2132 = sst [smem:[#allocation10_spill]] %s1623_s30  ;;  %s1754_s19 = sadd.s32 1, %s1623_s30  }
  0x15   : > { %2133 = sst [smem:[#allocation11_spill]] %s1754_s19  ;;  %s355_s1 = sadd.s32 1, %s1619_s0 }
  0x16   : > { %s352_s20 = ssub.s32 %s1623_s30, %s1754_s19  ;;  %p365_p0 = scmp.ne.s32.totalorder %s1619_s0, %s1615_s29 }
  0x17   : > { %p353_p1 = scmp.eq.s32.totalorder %s352_s20, 0  ;;  %p366_p2 = scmp.eq.s32.totalorder %s1750_s10, 1 }
  0x18   : > { %p371_p3 = scmp.ne.s32.totalorder %s1615_s29, %s1611_s28  ;;  %p372_p4 = scmp.eq.s32.totalorder %s1423_s18, 1 }
  0x19   : > { %s1765_s21 = scalar_select %p353_p1, %s1619_s0, %s355_s1  }
  0x1a   : > { %p1767_p5 = por %p366_p2, %p365_p0  ;;  %p1771_p6 = por %p372_p4, %p371_p3 }
  0x1b   : > { %2134 = sst [smem:[#allocation12_spill]] %s1765_s21  ;;  %p1426_p7 = scmp.ge.s32.totalorder %s1623_s30, 1 }
  0x1c   : > { %s2136_s23 = scalar_select %p1771_p6, 1, 0 }
  0x1d   : > { %p498_p8 = scmp.lt.s32.totalorder %s1623_s30, 3 }
  0x1e   : > { %2137 = sst [smem:[#allocation13_spill]] %s2136_s23 }
  0x1f   : > { %p499_p9 = pnand %p1426_p7, %p498_p8 }
  0x20   : > { %p567_p10 = scmp.lt.s32.totalorder (!%p499_p9), %s1750_s10, 1  ;;  %s2138_s1 = sld [smem:[#allocation15_spill]] (!%p499_p9) }
  0x21   : > { %502 = sbr.rel (%p499_p9) target bundleno = 2170 (0x87a), region = 76  ;;  %s1627_s23 = smov (!%p499_p9), 32  }
  0x22   : > { %s1631_s0 = smov (!%p499_p9), 120   ;;  %s728_s21 = sld [smem:[#allocation3]] (!%p499_p9) }
  0x23   : > { %s1635_s27 = smov (!%p499_p9), 16  }
  0x26   : > { %s568_s24 = scalar_select %p567_p10, %s1750_s10, 1  ;;  %vm594_vm0 = vcmask 261120   ;;  %vm737_vm1 = vcmask 64512   ;;  %v1626_v18 = vmov 32.0   ;;  %v638_v30 = vld [vmem:[%s2106_s4 + $0x30] sm:$0xff]  ;;  %v639_v31 = vld [vmem:[%s2106_s4 + $0x38] sm:$0xff] }
  0x27   : > { %1521 = vrcp.f32 %v1626_v18  ;;  %655 = vmatpush.msra.mxu0 %v638_v30  ;;  %675 = vmatpush.msra.mxu2 %v639_v31  ;;  %v636_v32 = vld [vmem:[%s2106_s4 + $0x20] sm:$0xff]  ;;  %v637_v33 = vld [vmem:[%s2106_s4 + $0x28] sm:$0xff]  ;;  %v634_v34 = vld [vmem:[%s2106_s4 + $0x10] sm:$0xff]  ;;  %vm933_vm6 = vcmask 130048   ;;  %vm1084_vm7 = vcmask 195584  }
  0x28   : > { %s1428_s25 = sshll.u32 %s568_s24, 3  ;;  %s1463_s26 = sshll.u32 %s568_s24, 6  ;;  %v635_v35 = vld [vmem:[%s2106_s4 + $0x18] sm:$0xff]  ;;  %v632_v36 = vld [vmem:[%s2106_s4] sm:$0xff]  ;;  %v633_v37 = vld [vmem:[%s2106_s4 + $0x8] sm:$0xff] }
  0x29   : > { %s570_s20 = scalar_lea.vmem %s2138_s1, %s1428_s25  ;;  %s575_s19 = scalar_lea.vmem %s2115_s13, %s1463_s26  ;;  %656 = vmatpush.msra.mxu0 %v636_v32  ;;  %676 = vmatpush.msra.mxu2 %v637_v33  ;;  %v683_v38 = vld [vmem:[%s2107_s5] sm:$0xff] }
  0x2a   : > { %s1788_s30 = scalar_lea.vmem %s2118_s16, %s1463_s26  ;;  %v1790_v0 = vld [vmem:[%s570_s20] sm:$0xff]  ;;  %v730_v2 = vld [vmem:[%s575_s19 + $0x8] sm:$0xff]  ;;  %v731_v4 = vld [vmem:[%s575_s19 + $0x10] sm:$0xff]  ;;  %s580_s28 = scalar_lea.vmem %s2116_s14, %s1463_s26  ;;  %697 = vrot.lane.b32.xlu1 %v683_v38, %s1627_s23 }
  0x2b   : > { %v729_v1 = vld [vmem:[%s575_s19] sm:$0xff]  ;;  %v595_v3 = vsel %vm594_vm0, %v1790_v0, 0.0  ;;  %v732_v5 = vld [vmem:[%s575_s19 + $0x18] sm:$0xff]  ;;  %v734_v7 = vld [vmem:[%s575_s19 + $0x28] sm:$0xff]  ;;  %657 = vmatpush.msra.mxu0 %v634_v34  ;;  %677 = vmatpush.msra.mxu2 %v635_v35  ;;  %s1628_s24 = smov 96   ;;  %s1629_s1 = smov 104  }
  0x2c   : > { %v733_v6 = vld [vmem:[%s575_s19 + $0x20] sm:$0xff]  ;;  %v735_v8 = vld [vmem:[%s575_s19 + $0x30] sm:$0xff]  ;;  %v736_v9 = vld [vmem:[%s575_s19 + $0x38] sm:$0xff]  ;;  %596 = vadd.xlane.f32.xlu0 %v595_v3  ;;  %s1808_s19 = scalar_lea.vmem %s2119_s17, %s1463_s26  ;;  %s1630_s20 = smov 112  }
  0x2d   : > { %738 = vst.msk [vmem:[%s1788_s30] sm:$0xff] %vm737_vm1, %v729_v1  ;;  %v746_v10 = vld [vmem:[%s580_s28] sm:$0xff]  ;;  %v747_v11 = vld [vmem:[%s580_s28 + $0x8] sm:$0xff]  ;;  %v748_v12 = vld [vmem:[%s580_s28 + $0x10] sm:$0xff]  ;;  %v1522_v19 = vpop.eup %1521  ;;  %658 = vmatpush.msra.mxu0 %v632_v36  ;;  %678 = vmatpush.msra.mxu2 %v633_v37  ;;  %s550_s26 = sand.u32 1, %s1615_s29  }
  0x2e   : > { %740 = vst.msk [vmem:[%s1788_s30 + $0x10] sm:$0xff] %vm737_vm1, %v731_v4  ;;  %v749_v13 = vld [vmem:[%s580_s28 + $0x18] sm:$0xff]  ;;  %v750_v14 = vld [vmem:[%s580_s28 + $0x20] sm:$0xff]  ;;  %v751_v15 = vld [vmem:[%s580_s28 + $0x28] sm:$0xff]  ;;  %v599_v20 = vmul.f32 32.0, %v1522_v19  ;;  %vm603_vm2 = vweird.f32 %v1522_v19 }
  0x2f   : > { %741 = vst.msk [vmem:[%s1788_s30 + $0x18] sm:$0xff] %vm737_vm1, %v732_v5  ;;  %v752_v16 = vld [vmem:[%s580_s28 + $0x30] sm:$0xff]  ;;  %v753_v17 = vld [vmem:[%s580_s28 + $0x38] sm:$0xff]  ;;  %v684_v39 = vld [vmem:[%s2108_s6] sm:$0xff]  ;;  %s774_s28 = scalar_lea.vmem %s1788_s30, %s728_s21 }
  0x30   : > { %742 = vst.msk [vmem:[%s1788_s30 + $0x20] sm:$0xff] %vm737_vm1, %v733_v6  ;;  %v600_v21 = vsub.f32 1.0, %v599_v20  ;;  %687 = vrot.lane.b32.xlu2 %v684_v39, %s1628_s24  ;;  %v1517_v49 = vld [vmem:[%s2104_s2] ss:$0 sm:$0xff] }
  0x31   : > { %743 = vst.msk [vmem:[%s1788_s30 + $0x28] sm:$0xff] %vm737_vm1, %v734_v7  ;;  %v1518_v52 = vld [vmem:[%s2105_s3] ss:$0 sm:$0xff] }
  0x32   : > { %744 = vst.msk [vmem:[%s1788_s30 + $0x30] sm:$0xff] %vm737_vm1, %v735_v8  ;;  %v601_v22 = vmul.f32 %v1522_v19, %v600_v21 }
  0x33   : > { %745 = vst.msk [vmem:[%s1788_s30 + $0x38] sm:$0xff] %vm737_vm1, %v736_v9 }
  0x34   : > { %754 = vst.msk [vmem:[%s1808_s19] sm:$0xff] %vm737_vm1, %v746_v10  ;;  %v602_v23 = vadd.f32 %v1522_v19, %v601_v22 }
  0x35   : > { %756 = vst.msk [vmem:[%s1808_s19 + $0x10] sm:$0xff] %vm737_vm1, %v748_v12 }
  0x36   : > { %757 = vst.msk [vmem:[%s1808_s19 + $0x18] sm:$0xff] %vm737_vm1, %v749_v13  ;;  %v1834_v24 = vsel %vm603_vm2, %v1522_v19, %v602_v23 }
  0x37   : > { %758 = vst.msk [vmem:[%s1808_s19 + $0x20] sm:$0xff] %vm737_vm1, %v750_v14 }
  0x38   : > { %759 = vst.msk [vmem:[%s1808_s19 + $0x28] sm:$0xff] %vm737_vm1, %v751_v15 }
  0x39   : > { %760 = vst.msk [vmem:[%s1808_s19 + $0x30] sm:$0xff] %vm737_vm1, %v752_v16 }
  0x3a   : > { %761 = vst.msk [vmem:[%s1808_s19 + $0x38] sm:$0xff] %vm737_vm1, %v753_v17 }
  0x3b   : > { %739 = vst.msk [vmem:[%s1788_s30 + $0x8] sm:$0xff] %vm737_vm1, %v730_v2 }
  0x3c   : > { %755 = vst.msk [vmem:[%s1808_s19 + $0x8] sm:$0xff] %vm737_vm1, %v747_v11 }
  0x8a   : > { %v688_v62 = vpop.permute.xlu2 %687 }
  0x9c   : > { %v698_v57 = vpop.permute.xlu1 %697 }
  0x9f   : > { %v597_v25 = vpop.xlane.xlu0 %596 }
  0xa0   : > { %v605_v26 = vmul.f32 %v1834_v24, %v597_v25 }
  0xa2   : > { %v606_v27 = vsub.f32 %v1790_v0, %v605_v26  ;;  %v928_v26 = vld [vmem:[%s2109_s7] sm:$0xff] }
  0xa4   : > { %v607_v28 = vmul.f32 %v606_v27, %v606_v27 }
  0xa6   : > { %v608_v29 = vsel %vm594_vm0, %v607_v28, 0.0 }
  0xa7   : > { %609 = vadd.xlane.f32.xlu0 %v608_v29 }
 0x11a   : > { %v610_v40 = vpop.xlane.xlu0 %609 }
 0x11b   : > { %v611_v41 = vmul.f32 %v610_v40, %v1834_v24 }
 0x11d   : > { %v612_v42 = vadd.f32 1e-05, %v611_v41 }
 0x11f   : > { %1523 = vrsqrt.f32 %v612_v42  ;;  %vm619_vm4 = vweird.f32 %v612_v42 }
 0x125   : > { %v1524_v43 = vpop.eup %1523 }
 0x126   : > { %v614_v44 = vmul.f32 %v1524_v43, %v612_v42  ;;  %vm620_vm3 = vweird.f32 %v1524_v43 }
 0x127   : > { %vm621_vm5 = vmor %vm619_vm4, %vm620_vm3 }
 0x128   : > { %v615_v45 = vmul.f32 %v1524_v43, %v614_v44 }
 0x12a   : > { %v616_v46 = vmul.f32 0.5, %v615_v45 }
 0x12c   : > { %v617_v47 = vsub.f32 1.5, %v616_v46 }
 0x12e   : > { %v618_v48 = vmul.f32 %v1524_v43, %v617_v47 }
 0x130   : > { %v622_v50 = vsel %vm621_vm5, %v1524_v43, %v618_v48 }
 0x131   : > { %v623_v51 = vmul.f32 %v622_v50, %v606_v27 }
 0x133   : > { %v627_v53 = vmul.f32 %v1517_v49, %v623_v51 }
 0x135   : > { %v631_v54 = vadd.f32 %v1518_v52, %v627_v53 }
 0x137   : > { %1437 = vmatmul.msk.f32.vlgmr.msra.gmra.mxu0 %vm594_vm0, %v631_v54  ;;  %1438 = vmatmul.msk.f32.vlgmr.msra.gmra.mxu2 %vm594_vm0, %v631_v54 }
 0x1b4   : > { %v1881_v58 = vpop.f32.mrf.mxu0 }
 0x1b5   : > { %v700_v59 = vmul.f32 %v698_v57, %v1881_v58  ;;  %v690_v63 = vmul.f32 %v688_v62, %v1881_v58  ;;  %v685_v2 = vmul.f32 %v683_v38, %v1881_v58 }
 0x1ba   : > { %v680_v55 = vpop.f32.mrf.mxu2 }
 0x1bb   : > { %v701_v56 = vmul.f32 %v684_v39, %v680_v55 }
 0x1bd   : > { %703 = vrot.lane.b32.xlu1 %v701_v56, %s1627_s23 }
 0x22f   : > { %v704_v60 = vpop.permute.xlu1 %703 }
 0x230   : > { %v706_v61 = vadd.f32 %v704_v60, %v700_v59 }
 0x232   : > { %719 = vrot.lane.b32.xlu1 %v706_v61, %s1629_s1  ;;  %717 = vrot.lane.b32.xlu0 %v706_v61, %s1630_s20 }
 0x233   : > { %715 = vrot.lane.b32.xlu2 %v706_v61, %s1631_s0 }
 0x23a   : > { %762 = vrot.lane.b32.xlu1 %v706_v61, %s1628_s24 }
 0x23b   : > { %692 = vrot.lane.b32.xlu2 %v690_v63, %s1627_s23  ;;  %s1632_s23 = smov 64  }
 0x28d   : > { %v716_v1 = vpop.permute.xlu2 %715 }
 0x28e   : > { %764 = vrot.lane.b32.xlu2 %v716_v1, %s1628_s24 }
 0x295   : > { %v693_v3 = vpop.permute.xlu2 %692 }
 0x296   : > { %v695_v4 = vadd.f32 %v693_v3, %v685_v2 }
 0x298   : > { %708 = vrot.lane.b32.xlu0 %v695_v4, %s1631_s0 }
 0x2a4   : > { %v720_v5 = vpop.permute.xlu1 %719  ;;  %v718_v6 = vpop.permute.xlu0 %717 }
 0x2a5   : > { %766 = vrot.lane.b32.xlu1 %v718_v6, %s1628_s24  ;;  %768 = vrot.lane.b32.xlu2 %v720_v5, %s1628_s24  ;;  %s1903_s24 = scalar_lea.vmem %s1808_s19, %s728_s21 }
 0x2ac   : > { %v763_v7 = vpop.permute.xlu1 %762 }
 0x2ad   : > { %775 = vst.msk [vmem:[%s774_s28] sm:$0xff] %vm737_vm1, %v763_v7  ;;  %710 = vrot.lane.b32.xlu2 %v695_v4, %s1630_s20  ;;  %712 = vrot.lane.b32.xlu1 %v695_v4, %s1629_s1 }
 0x2b5   : > { %724 = vrot.lane.b32.xlu2 %v1881_v58, %s1630_s20  ;;  %s2139_s20 = sld [smem:[#allocation16_spill]] }
 0x2bd   : > { %779 = vrot.lane.b32.xlu2 %v1881_v58, %s1632_s23 }
 0x2e8   : > { %v765_v8 = vpop.permute.xlu2 %764 }
 0x2e9   : > { %776 = vst.msk [vmem:[%s774_s28 + $0x10] sm:$0xff] %vm737_vm1, %v765_v8 }
 0x2ff   : > { %v769_v9 = vpop.permute.xlu2 %768 }
 0x300   : > { %778 = vst.msk [vmem:[%s774_s28 + $0x30] sm:$0xff] %vm737_vm1, %v769_v9 }
 0x307   : > { %v711_v10 = vpop.permute.xlu2 %710 }
 0x30a   : > { %v709_v21 = vpop.permute.xlu0 %708 }
 0x30f   : > { %v725_v11 = vpop.permute.xlu2 %724 }
 0x317   : > { %v767_v12 = vpop.permute.xlu1 %766  ;;  %v780_v13 = vpop.permute.xlu2 %779 }
 0x318   : > { %777 = vst.msk [vmem:[%s774_s28 + $0x20] sm:$0xff] %vm737_vm1, %v767_v12  ;;  %s1257_s28 = scalar_lea.sflag [#allocation5], %s550_s26 }
 0x319   : > { %792 = vst.msk [vmem:[%s1903_s24] sm:$0xff] %vm737_vm1, %v780_v13 }
 0x31f   : > { %v797_v14 = vld [vmem:[%s1788_s30 + $0x8] sm:$0xff]  ;;  %v799_v15 = vld [vmem:[%s1788_s30 + $0x18] sm:$0xff]  ;;  %v796_v17 = vld [vmem:[%s1788_s30] sm:$0xff]  ;;  %v713_v23 = vpop.permute.xlu1 %712 }
 0x320   : > { %v801_v16 = vld [vmem:[%s1788_s30 + $0x28] sm:$0xff]  ;;  %1439 = vmatpush.xpose.msk.msrb.mxu2 %vm737_vm1, %v797_v14  ;;  %1442 = vmatpush.xpose.msk.msra.mxu3 %vm737_vm1, %v799_v15  ;;  %v798_v18 = vld [vmem:[%s1788_s30 + $0x10] sm:$0xff]  ;;  %v800_v19 = vld [vmem:[%s1788_s30 + $0x20] sm:$0xff] }
 0x321   : > { %1445 = vmatpush.xpose.msk.msrb.mxu0 %vm737_vm1, %v801_v16  ;;  %v803_v20 = vld [vmem:[%s1788_s30 + $0x38] sm:$0xff]  ;;  %v802_v22 = vld [vmem:[%s1788_s30 + $0x30] sm:$0xff]  ;;  %s1633_s30 = smov 24  }
 0x324   : > { %1440 = vmatpush.xpose.msk.msrb.mxu2 %vm737_vm1, %v796_v17  ;;  %1443 = vmatpush.xpose.msk.msra.mxu3 %vm737_vm1, %v798_v18 }
 0x325   : > { %1446 = vmatpush.xpose.msk.msrb.mxu0 %vm737_vm1, %v800_v19 }
 0x327   : > { %1441 = vmatmul.msk.f32.vlgmr.msrb.gmra.mxu2 %vm737_vm1, %v695_v4  ;;  %1444 = vmatmul.msk.f32.vlgmr.msra.gmra.mxu3 %vm737_vm1, %v709_v21 }
 0x328   : > { %1448 = vmatpush.xpose.msk.msrb.mxu3 %vm737_vm1, %v803_v20  ;;  %1447 = vmatmul.msk.f32.vlgmr.msrb.gmra.mxu0 %vm737_vm1, %v711_v10 }
 0x32c   : > { %1449 = vmatpush.xpose.msk.msrb.mxu3 %vm737_vm1, %v802_v22 }
 0x32f   : > { %1450 = vmatmul.msk.f32.vlgmr.msrb.gmra.mxu3 %vm737_vm1, %v713_v23 }
 0x3a5   : > { %v893_v25 = vpop.f32.mrf.mxu0 }
 0x3a6   : > { %v926_v27 = vmul.f32 0.35355338, %v893_v25 }
 0x3a8   : > { %v931_v28 = vadd.f32 %v928_v26, %v926_v27 }
 0x3aa   : > { %v940_v29 = vsel %vm933_vm6, %v931_v28, -inf  ;;  %v865_v30 = vpop.f32.mrf.mxu3  ;;  %v837_v38 = vpop.f32.mrf.mxu2 }
 0x3ab   : > { %941 = vmax.xlane.f32.xlu1 %v940_v29  ;;  %v925_v31 = vmul.f32 0.35355338, %v865_v30  ;;  %v924_v39 = vmul.f32 0.35355338, %v837_v38  ;;  %v1088_v29 = vld [vmem:[%s2110_s8 + $0x10] sm:$0xff]  ;;  %v1087_v30 = vld [vmem:[%s2110_s8 + $0x8] sm:$0xff] }
 0x3ad   : > { %v930_v32 = vadd.f32 %v928_v26, %v925_v31  ;;  %v929_v40 = vadd.f32 %v928_v26, %v924_v39  ;;  %v1086_v31 = vld [vmem:[%s2110_s8] sm:$0xff] }
 0x3af   : > { %v937_v33 = vsel %vm933_vm6, %v930_v32, -inf  ;;  %v934_v41 = vsel %vm933_vm6, %v929_v40, -inf }
 0x3b0   : > { %938 = vmax.xlane.f32.xlu0 %v937_v33 }
 0x3b2   : > { %v921_v34 = vpop.f32.mrf.mxu3 }
 0x3b3   : > { %v927_v35 = vmul.f32 0.35355338, %v921_v34 }
 0x3b5   : > { %v932_v36 = vadd.f32 %v928_v26, %v927_v35 }
 0x3b7   : > { %v943_v37 = vsel %vm933_vm6, %v932_v36, -inf }
 0x3b8   : > { %944 = vmax.xlane.f32.xlu2 %v943_v37 }
 0x3c4   : > { %726 = vrot.lane.b32.xlu1 %v1881_v58, %s1629_s1  ;;  %722 = vrot.lane.b32.xlu0 %v1881_v58, %s1631_s0 }
 0x3d0   : > { %783 = vrot.lane.b32.xlu2 %v725_v11, %s1632_s23 }
 0x3ee   : > { %935 = vmax.xlane.f32.xlu0 %v934_v41 }
 0x41e   : > { %v942_v52 = vpop.xlane.xlu1 %941 }
 0x41f   : > { %v948_v56 = vsub.f32 %v931_v28, %v942_v52  ;;  %v1089_v28 = vld [vmem:[%s2110_s8 + $0x18] sm:$0xff]  ;;  %v1146_v52 = vld [vmem:[%s2113_s11] sm:$0xff] }
 0x421   : > { %v954_v57 = vmul.f32 1.442695, %v948_v56 }
 0x423   : > { %v939_v42 = vpop.xlane.xlu0 %938 }
 0x424   : > { %v947_v43 = vsub.f32 %v930_v32, %v939_v42 }
 0x426   : > { %v952_v44 = vmul.f32 1.442695, %v947_v43 }
 0x428   : > { %1525 = vpow2.f32 %v952_v44 }
 0x42b   : > { %v945_v45 = vpop.xlane.xlu2 %944 }
 0x42c   : > { %v949_v46 = vsub.f32 %v932_v36, %v945_v45 }
 0x42e   : > { %v1526_v47 = vpop.eup %1525  ;;  %v956_v48 = vmul.f32 1.442695, %v949_v46 }
 0x42f   : > { %v961_v49 = vsel %vm933_vm6, %v1526_v47, 0.0 }
 0x430   : > { %1527 = vpow2.f32 %v956_v48  ;;  %962 = vadd.xlane.f32.xlu2 %v961_v49  ;;  %v1150_v48 = vld [vmem:[%s2113_s11 + $0x20] sm:$0xff]  ;;  %v1151_v49 = vld [vmem:[%s2113_s11 + $0x28] sm:$0xff] }
 0x431   : > { %1529 = vpow2.f32 %v954_v57 }
 0x433   : > { %v784_v50 = vpop.permute.xlu2 %783 }
 0x434   : > { %794 = vst.msk [vmem:[%s1903_s24 + $0x20] sm:$0xff] %vm737_vm1, %v784_v50  ;;  %v1148_v50 = vld [vmem:[%s2113_s11 + $0x10] sm:$0xff] }
 0x436   : > { %v1528_v51 = vpop.eup %1527  ;;  %v723_v53 = vpop.permute.xlu0 %722 }
 0x437   : > { %781 = vrot.lane.b32.xlu1 %v723_v53, %s1632_s23  ;;  %v967_v54 = vsel %vm933_vm6, %v1528_v51, 0.0  ;;  %v727_v55 = vpop.permute.xlu1 %726  ;;  %v1530_v61 = vpop.eup %1529  ;;  %v1147_v53 = vld [vmem:[%s2113_s11 + $0x8] sm:$0xff] }
 0x438   : > { %968 = vadd.xlane.f32.xlu0 %v967_v54  ;;  %v964_v62 = vsel %vm933_vm6, %v1530_v61, 0.0 }
 0x43f   : > { %785 = vrot.lane.b32.xlu1 %v727_v55, %s1632_s23 }
 0x461   : > { %v936_v58 = vpop.xlane.xlu0 %935 }
 0x462   : > { %v946_v59 = vsub.f32 %v929_v40, %v936_v58 }
 0x464   : > { %v950_v60 = vmul.f32 1.442695, %v946_v59 }
 0x466   : > { %1531 = vpow2.f32 %v950_v60 }
 0x469   : > { %965 = vadd.xlane.f32.xlu1 %v964_v62 }
 0x46c   : > { %v1532_v63 = vpop.eup %1531 }
 0x46d   : > { %v958_v1 = vsel %vm933_vm6, %v1532_v63, 0.0 }
 0x46e   : > { %959 = vadd.xlane.f32.xlu0 %v958_v1 }
 0x4a3   : > { %v963_v3 = vpop.xlane.xlu2 %962 }
 0x4a4   : > { %1533 = vrcp.f32 %v963_v3 }
 0x4a9   : > { %v782_v2 = vpop.permute.xlu1 %781 }
 0x4aa   : > { %793 = vst.msk [vmem:[%s1903_s24 + $0x10] sm:$0xff] %vm737_vm1, %v782_v2  ;;  %v1534_v6 = vpop.eup %1533 }
 0x4ab   : > { %v969_v4 = vpop.xlane.xlu0 %968  ;;  %v975_v14 = vmul.f32 %v1534_v6, %v1526_v47  ;;  %v1152_v47 = vld [vmem:[%s2113_s11 + $0x30] sm:$0xff] }
 0x4ac   : > { %1535 = vrcp.f32 %v969_v4  ;;  %v1232_v6 = vld [vmem:[%s2114_s12 + $0x70] sm:$0xff] }
 0x4b1   : > { %v786_v5 = vpop.permute.xlu1 %785 }
 0x4b2   : > { %795 = vst.msk [vmem:[%s1903_s24 + $0x30] sm:$0xff] %vm737_vm1, %v786_v5  ;;  %v1536_v7 = vpop.eup %1535  ;;  %v1233_v5 = vld [vmem:[%s2114_s12 + $0x78] sm:$0xff] }
 0x4b3   : > { %v977_v17 = vmul.f32 %v1536_v7, %v1528_v51  ;;  %v1149_v51 = vld [vmem:[%s2113_s11 + $0x18] sm:$0xff]  ;;  %v1231_v7 = vld [vmem:[%s2114_s12 + $0x68] sm:$0xff] }
 0x4b9   : > { %v805_v8 = vld [vmem:[%s1808_s19 + $0x8] sm:$0xff]  ;;  %v807_v9 = vld [vmem:[%s1808_s19 + $0x18] sm:$0xff]  ;;  %v804_v12 = vld [vmem:[%s1808_s19] sm:$0xff] }
 0x4ba   : > { %v809_v10 = vld [vmem:[%s1808_s19 + $0x28] sm:$0xff]  ;;  %995 = vmatpush.msra.mxu2 %v805_v8  ;;  %1018 = vmatpush.msra.mxu3 %v807_v9  ;;  %v811_v11 = vld [vmem:[%s1808_s19 + $0x38] sm:$0xff]  ;;  %v806_v13 = vld [vmem:[%s1808_s19 + $0x10] sm:$0xff] }
 0x4bb   : > { %1041 = vmatpush.msra.mxu0 %v809_v10  ;;  %1064 = vmatpush.msra.mxu1 %v811_v11  ;;  %v808_v15 = vld [vmem:[%s1808_s19 + $0x20] sm:$0xff]  ;;  %v810_v16 = vld [vmem:[%s1808_s19 + $0x30] sm:$0xff]  ;;  %s1634_s19 = smov 8   ;;  %v1229_v9 = vld [vmem:[%s2114_s12 + $0x58] sm:$0xff] }
 0x4bc   : > { %996 = vmatpush.msra.mxu2 %v804_v12  ;;  %1019 = vmatpush.msra.mxu3 %v806_v13  ;;  %v1230_v8 = vld [vmem:[%s2114_s12 + $0x60] sm:$0xff]  ;;  %v1228_v10 = vld [vmem:[%s2114_s12 + $0x50] sm:$0xff]  ;;  %v1227_v11 = vld [vmem:[%s2114_s12 + $0x48] sm:$0xff] }
 0x4bd   : > { %1042 = vmatpush.msra.mxu0 %v808_v15  ;;  %1065 = vmatpush.msra.mxu1 %v810_v16  ;;  %v1226_v12 = vld [vmem:[%s2114_s12 + $0x40] sm:$0xff]  ;;  %v1225_v13 = vld [vmem:[%s2114_s12 + $0x38] sm:$0xff]  ;;  %v1223_v15 = vld [vmem:[%s2114_s12 + $0x28] sm:$0xff] }
 0x4be   : > { %1452 = vmatmul.msk.f32.vlgmr.msra.gmra.mxu3 %vm933_vm6, %v975_v14  ;;  %1454 = vmatmul.msk.f32.vlgmr.msra.gmra.mxu1 %vm933_vm6, %v977_v17  ;;  %v1224_v14 = vld [vmem:[%s2114_s12 + $0x30] sm:$0xff]  ;;  %v1222_v16 = vld [vmem:[%s2114_s12 + $0x20] sm:$0xff]  ;;  %v1221_v17 = vld [vmem:[%s2114_s12 + $0x18] sm:$0xff] }
 0x4bf   : > { %1105 = vmatpush.msrb.mxu2 %v1089_v28  ;;  %1169 = vmatpush.msrb.mxu3 %v1152_v47 }
 0x4c0   : > { %1234 = vmatpush.msrb.mxu1 %v1233_v5 }
 0x4c1   : > { %1106 = vmatpush.msrb.mxu2 %v1088_v29  ;;  %1170 = vmatpush.msrb.mxu3 %v1150_v48 }
 0x4c2   : > { %1235 = vmatpush.msrb.mxu1 %v1232_v6 }
 0x4c3   : > { %1107 = vmatpush.msrb.mxu2 %v1087_v30  ;;  %1171 = vmatpush.msrb.mxu3 %v1148_v50 }
 0x4c4   : > { %1236 = vmatpush.msrb.mxu1 %v1231_v7 }
 0x4c5   : > { %1108 = vmatpush.msrb.mxu2 %v1086_v31  ;;  %1172 = vmatpush.msrb.mxu3 %v1146_v52 }
 0x4c6   : > { %1237 = vmatpush.msrb.mxu1 %v1230_v8 }
 0x4c8   : > { %1238 = vmatpush.msrb.mxu1 %v1229_v9 }
 0x4ca   : > { %1239 = vmatpush.msrb.mxu1 %v1228_v10 }
 0x4cc   : > { %1240 = vmatpush.msrb.mxu1 %v1227_v11 }
 0x4ce   : > { %1241 = vmatpush.msrb.mxu1 %v1226_v12 }
 0x4d0   : > { %1242 = vmatpush.msrb.mxu1 %v1225_v13 }
 0x4d2   : > { %1243 = vmatpush.msrb.mxu1 %v1224_v14 }
 0x4d4   : > { %1244 = vmatpush.msrb.mxu1 %v1223_v15 }
 0x4d6   : > { %1245 = vmatpush.msrb.mxu1 %v1222_v16 }
 0x4d8   : > { %1246 = vmatpush.msrb.mxu1 %v1221_v17 }
 0x4dc   : > { %v966_v18 = vpop.xlane.xlu1 %965 }
 0x4dd   : > { %1537 = vrcp.f32 %v966_v18  ;;  %v1220_v18 = vld [vmem:[%s2114_s12 + $0x10] sm:$0xff] }
 0x4de   : > { %1247 = vmatpush.msrb.mxu1 %v1220_v18 }
 0x4e1   : > { %v960_v19 = vpop.xlane.xlu0 %959 }
 0x4e2   : > { %1539 = vrcp.f32 %v960_v19  ;;  %v1219_v19 = vld [vmem:[%s2114_s12 + $0x8] sm:$0xff] }
 0x4e3   : > { %v1538_v20 = vpop.eup %1537  ;;  %1248 = vmatpush.msrb.mxu1 %v1219_v19 }
 0x4e4   : > { %v976_v21 = vmul.f32 %v1538_v20, %v1530_v61  ;;  %v1218_v20 = vld [vmem:[%s2114_s12] sm:$0xff] }
 0x4e5   : > { %1249 = vmatpush.msrb.mxu1 %v1218_v20 }
 0x4e6   : > { %1453 = vmatmul.msk.f32.vlgmr.msra.gmra.mxu0 %vm933_vm6, %v976_v21 }
 0x4e8   : > { %v1540_v22 = vpop.eup %1539 }
 0x4e9   : > { %v974_v23 = vmul.f32 %v1540_v22, %v1532_v63  ;;  %v1519_v63 = vld [vmem:[%s2111_s9] ss:$0 sm:$0xff] }
 0x4eb   : > { %1451 = vmatmul.msk.f32.vlgmr.msra.gmra.mxu2 %vm933_vm6, %v974_v23 }
 0x53b   : > { %v1067_v25 = vpop.f32.mrf.mxu1 }
 0x53c   : > { %1079 = vrot.lane.b32.xlu1 %v1067_v25, %s1633_s30  ;;  %s1427_s30 = sshll.u32 %s550_s26, 3 }
 0x541   : > { %v1021_v26 = vpop.f32.mrf.mxu3 }
 0x542   : > { %1071 = vrot.lane.b32.xlu0 %v1021_v26, %s1634_s19  ;;  %s1460_s19 = sshll.u32 %s1750_s10, 3 }
 0x543   : > { %s1277_s1 = scalar_lea.hbm %s2117_s15, %s1460_s19 }
 0x544   : > { %s1281_s21 = sshll.u32 %s1277_s1, 4  ;;  %s1282_s21 = int_to_ptr.hbm [resolvable:$true] %s1281_s21 }
 0x545   : > { %s1573_s23 = sshra.s32 %s1282_s21, 4  ;;  %s1574_s23 = int_to_ptr.hbm [resolvable:$true] %s1573_s23 }
 0x546   : > { %s1575_s24 = scalar_lea.hbm %s1574_s23, 8  ;;  %p1580_p0 = scmp.lt.s32.totalorder %s1574_s23, %s2117_s15 }
 0x547   : > { %p1576_p11 = scmp.ne.s32.totalorder %s1574_s23, %s1575_s24 }
 0x549   : > { %p1577_p12 = pnand %p1576_p11, %p1767_p5 }
 0x54b   : > { %p1578_p13 = pneg %p1577_p12 }
 0x563   : > { %v1044_v27 = vpop.f32.mrf.mxu0 }
 0x564   : > { %1075 = vrot.lane.b32.xlu2 %v1044_v27, %s1635_s27 }
 0x56e   : > { %v998_v33 = vpop.f32.mrf.mxu2 }
 0x5ae   : > { %v1080_v36 = vpop.permute.xlu1 %1079 }
 0x5b4   : > { %v1072_v32 = vpop.permute.xlu0 %1071 }
 0x5b5   : > { %v1082_v34 = vsel %vm737_vm1, %v998_v33, %v1072_v32 }
 0x5be   : > { %v1076_v35 = vpop.permute.xlu2 %1075 }
 0x5bf   : > { %v1083_v37 = vsel %vm933_vm6, %v1082_v34, %v1076_v35 }
 0x5c0   : > { %v1085_v38 = vsel %vm1084_vm7, %v1083_v37, %v1080_v36 }
 0x5c1   : > { %1455 = vmatmul.msk.f32.vlgmr.msrb.gmra.mxu2 %vm594_vm0, %v1085_v38 }
 0x644   : > { %v1110_v39 = vpop.f32.mrf.mxu2 }
 0x645   : > { %v1980_v40 = vadd.f32 %v1110_v39, %v1790_v0  ;;  %v1153_v0 = vld [vmem:[%s2113_s11 + $0x38] sm:$0xff] }
 0x646   : > { %1189 = vmatpush.msrb.mxu0 %v1153_v0 }
 0x647   : > { %v1116_v41 = vsel %vm594_vm0, %v1980_v40, 0.0 }
 0x648   : > { %1117 = vadd.xlane.f32.xlu0 %v1116_v41  ;;  %1190 = vmatpush.msrb.mxu0 %v1151_v49 }
 0x64a   : > { %1191 = vmatpush.msrb.mxu0 %v1149_v51 }
 0x64c   : > { %1192 = vmatpush.msrb.mxu0 %v1147_v53 }
 0x6bb   : > { %v1118_v42 = vpop.xlane.xlu0 %1117 }
 0x6bc   : > { %v1119_v43 = vmul.f32 %v1118_v42, %v1834_v24 }
 0x6be   : > { %v1120_v44 = vsub.f32 %v1980_v40, %v1119_v43 }
 0x6c0   : > { %v1121_v45 = vmul.f32 %v1120_v44, %v1120_v44 }
 0x6c2   : > { %v1122_v46 = vsel %vm594_vm0, %v1121_v45, 0.0 }
 0x6c3   : > { %1123 = vadd.xlane.f32.xlu2 %v1122_v46 }
 0x736   : > { %v1124_v54 = vpop.xlane.xlu2 %1123 }
 0x737   : > { %v1125_v55 = vmul.f32 %v1124_v54, %v1834_v24  ;;  %v1520_v24 = vld [vmem:[%s2139_s20] ss:$0 sm:$0xff]  ;;  %s552_s20 = scalar_lea.vmem [#allocation4], %s1427_s30  ;;  %s1579_s30 = scalar_lea.hbm %s2117_s15, 16 }
 0x738   : > { %s1279_s0 = sshll.u32 %s552_s20, 4  ;;  %p1581_p1 = scmp.lt.s32.totalorder %s1579_s30, %s1575_s24  ;;  %s1280_s0 = int_to_ptr.vmem [resolvable:$true] %s1279_s0 }
 0x739   : > { %v1126_v56 = vadd.f32 1e-05, %v1125_v55 }
 0x73a   : > { %p1582_p2 = por %p1581_p1, %p1580_p0 }
 0x73b   : > { %1541 = vrsqrt.f32 %v1126_v56  ;;  %vm1133_vm9 = vweird.f32 %v1126_v56 }
 0x73c   : > { %p1583_p3 = pnand %p1582_p2, %p1578_p13 }
 0x741   : > { %v1542_v57 = vpop.eup %1541 }
 0x742   : > { %v1128_v58 = vmul.f32 %v1542_v57, %v1126_v56  ;;  %vm1134_vm8 = vweird.f32 %v1542_v57 }
 0x743   : > { %vm1135_vm10 = vmor %vm1133_vm9, %vm1134_vm8 }
 0x744   : > { %v1129_v59 = vmul.f32 %v1542_v57, %v1128_v58 }
 0x746   : > { %v1130_v60 = vmul.f32 0.5, %v1129_v59 }
 0x748   : > { %v1131_v61 = vsub.f32 1.5, %v1130_v60 }
 0x74a   : > { %v1132_v62 = vmul.f32 %v1542_v57, %v1131_v61 }
 0x74c   : > { %v1136_v1 = vsel %vm1135_vm10, %v1542_v57, %v1132_v62 }
 0x74d   : > { %v1137_v2 = vmul.f32 %v1136_v1, %v1120_v44 }
 0x74f   : > { %v1141_v3 = vmul.f32 %v1519_v63, %v1137_v2 }
 0x751   : > { %v1145_v4 = vadd.f32 %v1520_v24, %v1141_v3 }
 0x753   : > { %1456 = vmatmul.msk.f32.vlgmr.msrb.gmra.mxu3 %vm594_vm0, %v1145_v4  ;;  %1457 = vmatmul.msk.f32.vlgmr.msrb.gmra.mxu0 %vm594_vm0, %v1145_v4 }
 0x7d0   : > { %v1194_v37 = vpop.f32.mrf.mxu0 }
 0x7d6   : > { %v1174_v21 = vpop.f32.mrf.mxu3 }
 0x7d7   : > { %v1458_v22 = vmul.f32 -1.442695, %v1174_v21 }
 0x7d9   : > { %1543 = vpow2.f32 %v1458_v22 }
 0x7df   : > { %v1544_v23 = vpop.eup %1543 }
 0x7e0   : > { %v1200_v25 = vadd.f32 1.0, %v1544_v23 }
 0x7e2   : > { %1545 = vrcp.f32 %v1200_v25  ;;  %v1212_v29 = vand.u32 2147483648, %v1200_v25  ;;  %v1210_v31 = vand.u32 2147483647, %v1200_v25  ;;  %vm1206_vm12 = vweird.f32 %v1200_v25 }
 0x7e4   : > { %v1213_v33 = vor.u32 1.1754944e-38, %v1212_v29  ;;  %vm1211_vm14 = vcmp.eq.f32.partialorder %v1210_v31, 8.507059e+37 }
 0x7e8   : > { %v1546_v26 = vpop.eup %1545 }
 0x7e9   : > { %v1202_v27 = vmul.f32 %v1546_v26, %v1200_v25  ;;  %vm1207_vm11 = vweird.f32 %v1546_v26 }
 0x7ea   : > { %vm1208_vm13 = vmor %vm1206_vm12, %vm1207_vm11 }
 0x7eb   : > { %v1203_v28 = vsub.f32 1.0, %v1202_v27 }
 0x7ed   : > { %v1204_v30 = vmul.f32 %v1546_v26, %v1203_v28 }
 0x7ef   : > { %v1205_v32 = vadd.f32 %v1546_v26, %v1204_v30 }
 0x7f1   : > { %v1209_v34 = vsel %vm1208_vm13, %v1546_v26, %v1205_v32 }
 0x7f2   : > { %v1214_v35 = vsel %vm1211_vm14, %v1213_v33, %v1209_v34 }
 0x7f3   : > { %v1216_v36 = vmul.f32 %v1214_v35, %v1174_v21 }
 0x7f5   : > { %v1217_v38 = vmul.f32 %v1216_v36, %v1194_v37 }
 0x7f7   : > { %1250 = vmatmul.f32.vlgmr.msrb.gmra.mxu1 %v1217_v38 }
 0x874   : > { %v1251_v39 = vpop.f32.mrf.mxu1 }
 0x875   : > { %v1254_v41 = vadd.f32 %v1251_v39, %v1980_v40 }
 0x877   : > { %1255 = vst.msk [vmem:[%s552_s20] sm:$0xff] %vm594_vm0, %v1254_v41 }
 0x878   : > { %1586 = shalt.err (!%p1583_p3)
}
 0x879   : > { %1467 = dma.vmem_to_hbm [thread:$0]  (%p1767_p5), %s1280_s0, 128, %s1282_s21, %s1257_s28  }
 0x87a PF: > { %s2140_s26 = sld [smem:[#allocation10_spill]] }
 0x87b   : > { %s2141_s18 = sld [smem:[#allocation8_spill]] }
 0x880   : > { %p1473_p4 = scmp.ge.s32.totalorder %s2140_s26, 2 }
 0x881   : > { %s1299_s20 = sand.u32 1, %s2141_s18  }
 0x882   : > { %p1470_p7 = pnand %p1473_p4, %p1771_p6  ;;  %s1300_s10 = scalar_lea.sflag [#allocation5], %s1299_s20 }
 0x884   : > { %p1471_p8 = pneg %p1470_p7 }
 0x886   : > { %1606 = dma.done.wait (%p1471_p8), %s1300_s10, 128  }
 0x887   : > { %1608 = vsyncadd (%p1471_p8), %s1300_s10, 4294967168  ;;  %s2143_s30 = sld [smem:[#allocation11_spill]]  ;;  %s2146_s28 = smov %s1615_s29 }
 0x888   : > { %s2144_s23 = sld [smem:[#allocation9_spill]] }
 0x889   : > { %s2145_s0 = sld [smem:[#allocation12_spill]] }
 0x88d   : > { %p36_p9 = scmp.ge.s32.totalorder %s2143_s30, 4  }
 0x88e   : > { %s2147_s29 = smov %s2144_s23 }
 0x88f   :  { %38 = sbr.rel (!%p36_p9) target bundleno = 18 (0x12), region = 143 }
 0x894   :  { %1322 = vsyncpa [#allocation5], 1 }
 0x895   :  { %1324 = vsyncpa [#allocation5 + $0x1], 1 }

</bundles_post_ra>
